<compile_context>
chip_gen: v6e
topology: v6e:2x2x1
jax: 0.10.0
libtpu: 0.0.40
codegen_flags: <defaults>
</compile_context>

<pallas_src>
import jax
import jax.numpy as jnp
from jax import lax
from jax.experimental import pallas as pl
from jax.experimental.pallas import tpu as pltpu

NUM_CLASSES = 6


def _round_up(x, m):
    return (x + m - 1) // m * m


# ---------------- fused 3x3 conv + bias + ReLU + 2x2 max-pool ----------------

def _conv3x3_relu_pool_kernel(x_ref, w_ref, b_ref, o_ref, m_scr):
    """One grid step = one batch image x one pair of conv output rows.

    x_ref : (1, H+2, W+2, Cin)  bf16  whole padded image (resident per batch n)
    w_ref : (3, 3, Cin, Cout)   bf16  resident
    b_ref : (1, Cout)           f32   resident
    o_ref : (1, 1, Wo, Cout)    bf16  one pooled output row (Wo = W // 2)
    m_scr : (W, Cout)           f32   scratch: row-wise max before width pool
    """
    i = pl.program_id(1)
    Wd, Cout = m_scr.shape
    Wo = o_ref.shape[2]
    r0 = 2 * i                                   # first padded input row of the pair

    acc0 = jnp.zeros((Wd, Cout), jnp.float32)    # conv output row 2*i
    acc1 = jnp.zeros((Wd, Cout), jnp.float32)    # conv output row 2*i + 1
    for dy in range(3):                          # fused im2col: 9 shifted taps
        for dx in range(3):
            w_tap = w_ref[dy, dx]                # (Cin, Cout) bf16
            acc0 += jnp.dot(x_ref[0, r0 + dy, dx:dx + Wd, :], w_tap,
                            preferred_element_type=jnp.float32)
            acc1 += jnp.dot(x_ref[0, r0 + dy + 1, dx:dx + Wd, :], w_tap,
                            preferred_element_type=jnp.float32)

    bias = b_ref[...]                            # (1, Cout) f32
    a0 = jnp.maximum(acc0 + bias, 0.0)           # bias + ReLU in f32
    a1 = jnp.maximum(acc1 + bias, 0.0)
    m_scr[...] = jnp.maximum(a0, a1)             # max over the 2 pooled rows

    even = m_scr[pl.ds(0, Wo, stride=2), :]      # max over the 2 pooled columns
    odd = m_scr[pl.ds(1, Wo, stride=2), :]
    o_ref[0, 0] = jnp.maximum(even, odd).astype(o_ref.dtype)


def conv3x3_relu_pool(x_nhwc, w_hwio, b):
    """Fused 3x3 stride-1 pad-1 conv + bias + ReLU + 2x2/stride-2 max-pool."""
    N, H, W, Cin = x_nhwc.shape
    Cout = w_hwio.shape[-1]
    Ho, Wo = H // 2, W // 2

    xp = jnp.pad(x_nhwc.astype(jnp.bfloat16), ((0, 0), (1, 1), (1, 1), (0, 0)))
    wb = w_hwio.astype(jnp.bfloat16)
    bf = b.reshape(1, Cout).astype(jnp.float32)

    # TODO(synk): optionally pad Cout to 128 lanes (v6e MXU-column util); kept
    # at the true channel count so the flatten feeding fc1 stays exact.
    return pl.pallas_call(
        _conv3x3_relu_pool_kernel,
        out_shape=jax.ShapeDtypeStruct((N, Ho, Wo, Cout), jnp.bfloat16),
        grid=(N, Ho),
        in_specs=[
            pl.BlockSpec((1, H + 2, W + 2, Cin), lambda n, i: (n, 0, 0, 0)),
            pl.BlockSpec((3, 3, Cin, Cout), lambda n, i: (0, 0, 0, 0)),
            pl.BlockSpec((1, Cout), lambda n, i: (0, 0)),
        ],
        out_specs=pl.BlockSpec((1, 1, Wo, Cout), lambda n, i: (n, i, 0, 0)),
        scratch_shapes=[pltpu.VMEM((W, Cout), jnp.float32)],
        compiler_params=pltpu.CompilerParams(
            dimension_semantics=("parallel", "parallel")),
    )(xp, wb, bf)


# ---------------------- fused fc1 + ReLU + fc2 head --------------------------

def _mlp_head_kernel(x_ref, w1_ref, b1_ref, w2_ref, b2_ref, o_ref, acc_ref):
    """logits tile = relu(x @ W1 + b1) @ W2 + b2.  Grid = (M tiles, K tiles)."""
    k = pl.program_id(1)

    @pl.when(k == 0)
    def _():
        acc_ref[...] = jnp.zeros_like(acc_ref)

    acc_ref[...] += jnp.dot(x_ref[...], w1_ref[...],
                            preferred_element_type=jnp.float32)

    @pl.when(k == pl.num_programs(1) - 1)
    def _():
        h = jnp.maximum(acc_ref[...] + b1_ref[...], 0.0)       # fc1 + ReLU (f32)
        h = h.astype(w2_ref.dtype)                             # bf16 for the MXU
        o_ref[...] = (jnp.dot(h, w2_ref[...], preferred_element_type=jnp.float32)
                      + b2_ref[...]).astype(o_ref.dtype)


def pallas_mlp_head(feat, w1, b1, w2, b2, num_out):
    """(relu(feat @ w1 + b1)) @ w2 + b2 as one fused pallas_call."""
    M, K = feat.shape
    Hd = w1.shape[1]                                   # 512
    Np = _round_up(num_out, 128)                       # lane-dense fc2 output
    tm = min(256, _round_up(M, 8))
    Mp = _round_up(M, tm)
    tk = K                                             # fc1-weight K tile
    for cand in (512, 256, 128):
        if K % cand == 0:
            tk = cand
            break

    xb = jnp.pad(feat.astype(jnp.bfloat16), ((0, Mp - M), (0, 0)))
    w1b = w1.astype(jnp.bfloat16)
    b1f = b1.reshape(1, Hd).astype(jnp.float32)
    w2b = jnp.pad(w2.astype(jnp.bfloat16), ((0, 0), (0, Np - num_out)))
    b2f = jnp.pad(b2.reshape(1, num_out).astype(jnp.float32),
                  ((0, 0), (0, Np - num_out)))

    out = pl.pallas_call(
        _mlp_head_kernel,
        out_shape=jax.ShapeDtypeStruct((Mp, Np), jnp.float32),
        grid=(Mp // tm, K // tk),
        in_specs=[
            pl.BlockSpec((tm, tk), lambda i, k: (i, k)),
            pl.BlockSpec((tk, Hd), lambda i, k: (k, 0)),
            pl.BlockSpec((1, Hd), lambda i, k: (0, 0)),
            pl.BlockSpec((Hd, Np), lambda i, k: (0, 0)),
            pl.BlockSpec((1, Np), lambda i, k: (0, 0)),
        ],
        out_specs=pl.BlockSpec((tm, Np), lambda i, k: (i, 0)),
        scratch_shapes=[pltpu.VMEM((tm, Hd), jnp.float32)],
        compiler_params=pltpu.CompilerParams(
            dimension_semantics=("parallel", "arbitrary")),
    )(xb, w1b, b1f, w2b, b2f)
    return out[:M, :num_out]


# ------------------------------ forward passes --------------------------------

def cnn_forward(x_nchw, p):
    """Pallas implementation of CNN.forward. x_nchw: (N, 3, H, W) float32."""
    N = x_nchw.shape[0]
    x = jnp.transpose(x_nchw, (0, 2, 3, 1))                    # NHWC (one pass)

    y = conv3x3_relu_pool(x, p["w1"], p["b1"])                 # (N, H/2, W/2, 32) bf16
    y = conv3x3_relu_pool(y, p["w2"], p["b2"])                 # (N, H/4, W/4, 64) bf16

    _, H4, W4, C4 = y.shape
    feat = y.reshape(N, H4 * W4 * C4)                          # free NHWC flatten

    # Permute fc1 weight rows from PyTorch's NCHW-flatten order to NHWC-flatten
    # order (one small weight pass) so the activation never needs an HBM
    # transpose before fc1.
    Hd = p["wfc1"].shape[1]
    w1r = (p["wfc1"].reshape(C4, H4, W4, Hd)
           .transpose(1, 2, 0, 3).reshape(H4 * W4 * C4, Hd))

    return pallas_mlp_head(feat, w1r, p["bfc1"], p["wfc2"], p["bfc2"], NUM_CLASSES)


def ref_forward(x_nchw, p):
    """Pure-JAX f32 reference (lax conv / reduce_window) for validation."""
    N = x_nchw.shape[0]
    x = jnp.transpose(x_nchw, (0, 2, 3, 1))
    dn = ("NHWC", "HWIO", "NHWC")
    y = lax.conv_general_dilated(x, p["w1"], (1, 1), "SAME", dimension_numbers=dn) + p["b1"]
    y = jnp.maximum(y, 0.0)
    y = lax.reduce_window(y, -jnp.inf, lax.max, (1, 2, 2, 1), (1, 2, 2, 1), "VALID")
    y = lax.conv_general_dilated(y, p["w2"], (1, 1), "SAME", dimension_numbers=dn) + p["b2"]
    y = jnp.maximum(y, 0.0)
    y = lax.reduce_window(y, -jnp.inf, lax.max, (1, 2, 2, 1), (1, 2, 2, 1), "VALID")
    feat = jnp.transpose(y, (0, 3, 1, 2)).reshape(N, -1)       # NCHW flatten
    h1 = jnp.maximum(feat @ p["wfc1"] + p["bfc1"], 0.0)
    return h1 @ p["wfc2"] + p["bfc2"]


def init_params(key, in_ch, H, W, num_classes):
    ks = jax.random.split(key, 8)

    def winit(k, shape, fan_in):
        return jax.random.normal(k, shape, jnp.float32) / jnp.sqrt(float(fan_in))

    fc1_in = 64 * (H // 4) * (W // 4)   # dynamic fc1 sizing from the PyTorch module
    return {
        "w1": winit(ks[0], (3, 3, in_ch, 32), 9 * in_ch),          # HWIO
        "b1": 0.05 * jax.random.normal(ks[1], (1, 32), jnp.float32),
        "w2": winit(ks[2], (3, 3, 32, 64), 9 * 32),                # HWIO
        "b2": 0.05 * jax.random.normal(ks[3], (1, 64), jnp.float32),
        "wfc1": winit(ks[4], (fc1_in, 512), fc1_in),
        "bfc1": 0.05 * jax.random.normal(ks[5], (1, 512), jnp.float32),
        "wfc2": winit(ks[6], (512, num_classes), 512),
        "bfc2": 0.05 * jax.random.normal(ks[7], (1, num_classes), jnp.float32),
    }


if __name__ == "__main__":
    key = jax.random.PRNGKey(0)
    kx, kp = jax.random.split(key)

    N, C, H, W = 2, 3, 16, 16                    # conv1 requires 3 input channels
    x = jax.random.normal(kx, (N, C, H, W), jnp.float32)
    params = init_params(kp, C, H, W, NUM_CLASSES)

    fwd = jax.jit(cnn_forward)
    out = jax.block_until_ready(fwd(x, params))

    assert out.shape == (N, NUM_CLASSES), out.shape
    ref = jax.block_until_ready(ref_forward(x, params))
    assert bool(jnp.all(jnp.isfinite(out)))
    # bf16 matmul datapath (f32 accumulation) vs. f32 reference -> loose tolerance.
    assert bool(jnp.allclose(out, ref, rtol=1e-1, atol=1e-1)), (out, ref)

    print("KERNEL_OK")
</pallas_src>

<mosaic_0001>
module attributes {stable_mosaic.version = 11 : i64} {
  func.func @_conv3x3_relu_pool_kernel(%arg0: i32, %arg1: i32, %arg2: memref<1x18x18x3xbf16, #tpu.memory_space<vmem>>, %arg3: memref<3x3x3x32xbf16, #tpu.memory_space<vmem>>, %arg4: memref<1x32xf32, #tpu.memory_space<vmem>>, %arg5: memref<1x1x8x32xbf16, #tpu.memory_space<vmem>>, %arg6: memref<16x32xf32, #tpu.memory_space<vmem>>) attributes {dimension_semantics = [#tpu.dimension_semantics<parallel>, #tpu.dimension_semantics<parallel>], iteration_bounds = array<i64: 2, 8>, scalar_prefetch = 0 : i64, scratch_operands = 1 : i64, tpu.core_type = #tpu.core_type<tc>, window_params = [{transform_indices = @transform_0, window_bounds = array<i64: 1, 18, 18, 3>}, {pipeline_mode = #tpu.pipeline_mode<synchronous>, transform_indices = @transform_1, window_bounds = array<i64: 3, 3, 3, 32>}, {pipeline_mode = #tpu.pipeline_mode<synchronous>, transform_indices = @transform_2, window_bounds = array<i64: 1, 32>}, {transform_indices = @transform_3, window_bounds = array<i64: 1, 1, 8, 32>}]} {
    %c2_i32 = arith.constant 2 : i32
    %0 = arith.muli %c2_i32, %arg1 : i32
    %cst = arith.constant 0.000000e+00 : f32
    %1 = vector.broadcast %cst : f32 to vector<16x32xf32>
    %cst_0 = arith.constant 0.000000e+00 : f32
    %2 = vector.broadcast %cst_0 : f32 to vector<16x32xf32>
    %c0 = arith.constant 0 : index
    %c0_1 = arith.constant 0 : index
    %c0_2 = arith.constant 0 : index
    %c0_3 = arith.constant 0 : index
    %3 = vector.load %arg3[%c0, %c0_1, %c0_2, %c0_3] : memref<3x3x3x32xbf16, #tpu.memory_space<vmem>>, vector<1x1x3x32xbf16>
    %4 = vector.shape_cast %3 : vector<1x1x3x32xbf16> to vector<3x32xbf16>
    %c0_i32 = arith.constant 0 : i32
    %5 = arith.addi %0, %c0_i32 : i32
    %c0_4 = arith.constant 0 : index
    %6 = arith.index_cast %5 : i32 to index
    %c0_5 = arith.constant 0 : index
    %c0_6 = arith.constant 0 : index
    %7 = vector.load %arg2[%c0_4, %6, %c0_5, %c0_6] : memref<1x18x18x3xbf16, #tpu.memory_space<vmem>>, vector<1x1x16x3xbf16>
    %8 = vector.shape_cast %7 : vector<1x1x16x3xbf16> to vector<16x3xbf16>
    %cst_7 = arith.constant dense<0.000000e+00> : vector<16x32xf32>
    %9 = tpu.matmul %8, %4, %cst_7 {dimension_numbers = #tpu.dot_dimension_numbers<[1], [0], [0], [1], [0, 0, 1, 1], [], []>} : vector<16x3xbf16>, vector<3x32xbf16>, vector<16x32xf32> -> vector<16x32xf32>
    %10 = arith.addf %1, %9 : vector<16x32xf32>
    %c0_i32_8 = arith.constant 0 : i32
    %11 = arith.addi %0, %c0_i32_8 : i32
    %c1_i32 = arith.constant 1 : i32
    %12 = arith.addi %11, %c1_i32 : i32
    %c0_9 = arith.constant 0 : index
    %13 = arith.index_cast %12 : i32 to index
    %c0_10 = arith.constant 0 : index
    %c0_11 = arith.constant 0 : index
    %14 = vector.load %arg2[%c0_9, %13, %c0_10, %c0_11] : memref<1x18x18x3xbf16, #tpu.memory_space<vmem>>, vector<1x1x16x3xbf16>
    %15 = vector.shape_cast %14 : vector<1x1x16x3xbf16> to vector<16x3xbf16>
    %cst_12 = arith.constant dense<0.000000e+00> : vector<16x32xf32>
    %16 = tpu.matmul %15, %4, %cst_12 {dimension_numbers = #tpu.dot_dimension_numbers<[1], [0], [0], [1], [0, 0, 1, 1], [], []>} : vector<16x3xbf16>, vector<3x32xbf16>, vector<16x32xf32> -> vector<16x32xf32>
    %17 = arith.addf %2, %16 : vector<16x32xf32>
    %c0_13 = arith.constant 0 : index
    %c1 = arith.constant 1 : index
    %c0_14 = arith.constant 0 : index
    %c0_15 = arith.constant 0 : index
    %18 = vector.load %arg3[%c0_13, %c1, %c0_14, %c0_15] : memref<3x3x3x32xbf16, #tpu.memory_space<vmem>>, vector<1x1x3x32xbf16>
    %19 = vector.shape_cast %18 : vector<1x1x3x32xbf16> to vector<3x32xbf16>
    %c0_i32_16 = arith.constant 0 : i32
    %20 = arith.addi %0, %c0_i32_16 : i32
    %c0_17 = arith.constant 0 : index
    %21 = arith.index_cast %20 : i32 to index
    %c1_18 = arith.constant 1 : index
    %c0_19 = arith.constant 0 : index
    %22 = vector.load %arg2[%c0_17, %21, %c1_18, %c0_19] : memref<1x18x18x3xbf16, #tpu.memory_space<vmem>>, vector<1x1x16x3xbf16>
    %23 = vector.shape_cast %22 : vector<1x1x16x3xbf16> to vector<16x3xbf16>
    %cst_20 = arith.constant dense<0.000000e+00> : vector<16x32xf32>
    %24 = tpu.matmul %23, %19, %cst_20 {dimension_numbers = #tpu.dot_dimension_numbers<[1], [0], [0], [1], [0, 0, 1, 1], [], []>} : vector<16x3xbf16>, vector<3x32xbf16>, vector<16x32xf32> -> vector<16x32xf32>
    %25 = arith.addf %10, %24 : vector<16x32xf32>
    %c0_i32_21 = arith.constant 0 : i32
    %26 = arith.addi %0, %c0_i32_21 : i32
    %c1_i32_22 = arith.constant 1 : i32
    %27 = arith.addi %26, %c1_i32_22 : i32
    %c0_23 = arith.constant 0 : index
    %28 = arith.index_cast %27 : i32 to index
    %c1_24 = arith.constant 1 : index
    %c0_25 = arith.constant 0 : index
    %29 = vector.load %arg2[%c0_23, %28, %c1_24, %c0_25] : memref<1x18x18x3xbf16, #tpu.memory_space<vmem>>, vector<1x1x16x3xbf16>
    %30 = vector.shape_cast %29 : vector<1x1x16x3xbf16> to vector<16x3xbf16>
    %cst_26 = arith.constant dense<0.000000e+00> : vector<16x32xf32>
    %31 = tpu.matmul %30, %19, %cst_26 {dimension_numbers = #tpu.dot_dimension_numbers<[1], [0], [0], [1], [0, 0, 1, 1], [], []>} : vector<16x3xbf16>, vector<3x32xbf16>, vector<16x32xf32> -> vector<16x32xf32>
    %32 = arith.addf %17, %31 : vector<16x32xf32>
    %c0_27 = arith.constant 0 : index
    %c2 = arith.constant 2 : index
    %c0_28 = arith.constant 0 : index
    %c0_29 = arith.constant 0 : index
    %33 = vector.load %arg3[%c0_27, %c2, %c0_28, %c0_29] : memref<3x3x3x32xbf16, #tpu.memory_space<vmem>>, vector<1x1x3x32xbf16>
    %34 = vector.shape_cast %33 : vector<1x1x3x32xbf16> to vector<3x32xbf16>
    %c0_i32_30 = arith.constant 0 : i32
    %35 = arith.addi %0, %c0_i32_30 : i32
    %c0_31 = arith.constant 0 : index
    %36 = arith.index_cast %35 : i32 to index
    %c2_32 = arith.constant 2 : index
    %c0_33 = arith.constant 0 : index
    %37 = vector.load %arg2[%c0_31, %36, %c2_32, %c0_33] : memref<1x18x18x3xbf16, #tpu.memory_space<vmem>>, vector<1x1x16x3xbf16>
    %38 = vector.shape_cast %37 : vector<1x1x16x3xbf16> to vector<16x3xbf16>
    %cst_34 = arith.constant dense<0.000000e+00> : vector<16x32xf32>
    %39 = tpu.matmul %38, %34, %cst_34 {dimension_numbers = #tpu.dot_dimension_numbers<[1], [0], [0], [1], [0, 0, 1, 1], [], []>} : vector<16x3xbf16>, vector<3x32xbf16>, vector<16x32xf32> -> vector<16x32xf32>
    %40 = arith.addf %25, %39 : vector<16x32xf32>
    %c0_i32_35 = arith.constant 0 : i32
    %41 = arith.addi %0, %c0_i32_35 : i32
    %c1_i32_36 = arith.constant 1 : i32
    %42 = arith.addi %41, %c1_i32_36 : i32
    %c0_37 = arith.constant 0 : index
    %43 = arith.index_cast %42 : i32 to index
    %c2_38 = arith.constant 2 : index
    %c0_39 = arith.constant 0 : index
    %44 = vector.load %arg2[%c0_37, %43, %c2_38, %c0_39] : memref<1x18x18x3xbf16, #tpu.memory_space<vmem>>, vector<1x1x16x3xbf16>
    %45 = vector.shape_cast %44 : vector<1x1x16x3xbf16> to vector<16x3xbf16>
    %cst_40 = arith.constant dense<0.000000e+00> : vector<16x32xf32>
    %46 = tpu.matmul %45, %34, %cst_40 {dimension_numbers = #tpu.dot_dimension_numbers<[1], [0], [0], [1], [0, 0, 1, 1], [], []>} : vector<16x3xbf16>, vector<3x32xbf16>, vector<16x32xf32> -> vector<16x32xf32>
    %47 = arith.addf %32, %46 : vector<16x32xf32>
    %c1_41 = arith.constant 1 : index
    %c0_42 = arith.constant 0 : index
    %c0_43 = arith.constant 0 : index
    %c0_44 = arith.constant 0 : index
    %48 = vector.load %arg3[%c1_41, %c0_42, %c0_43, %c0_44] : memref<3x3x3x32xbf16, #tpu.memory_space<vmem>>, vector<1x1x3x32xbf16>
    %49 = vector.shape_cast %48 : vector<1x1x3x32xbf16> to vector<3x32xbf16>
    %c1_i32_45 = arith.constant 1 : i32
    %50 = arith.addi %0, %c1_i32_45 : i32
    %c0_46 = arith.constant 0 : index
    %51 = arith.index_cast %50 : i32 to index
    %c0_47 = arith.constant 0 : index
    %c0_48 = arith.constant 0 : index
    %52 = vector.load %arg2[%c0_46, %51, %c0_47, %c0_48] : memref<1x18x18x3xbf16, #tpu.memory_space<vmem>>, vector<1x1x16x3xbf16>
    %53 = vector.shape_cast %52 : vector<1x1x16x3xbf16> to vector<16x3xbf16>
    %cst_49 = arith.constant dense<0.000000e+00> : vector<16x32xf32>
    %54 = tpu.matmul %53, %49, %cst_49 {dimension_numbers = #tpu.dot_dimension_numbers<[1], [0], [0], [1], [0, 0, 1, 1], [], []>} : vector<16x3xbf16>, vector<3x32xbf16>, vector<16x32xf32> -> vector<16x32xf32>
    %55 = arith.addf %40, %54 : vector<16x32xf32>
    %c1_i32_50 = arith.constant 1 : i32
    %56 = arith.addi %0, %c1_i32_50 : i32
    %c1_i32_51 = arith.constant 1 : i32
    %57 = arith.addi %56, %c1_i32_51 : i32
    %c0_52 = arith.constant 0 : index
    %58 = arith.index_cast %57 : i32 to index
    %c0_53 = arith.constant 0 : index
    %c0_54 = arith.constant 0 : index
    %59 = vector.load %arg2[%c0_52, %58, %c0_53, %c0_54] : memref<1x18x18x3xbf16, #tpu.memory_space<vmem>>, vector<1x1x16x3xbf16>
    %60 = vector.shape_cast %59 : vector<1x1x16x3xbf16> to vector<16x3xbf16>
    %cst_55 = arith.constant dense<0.000000e+00> : vector<16x32xf32>
    %61 = tpu.matmul %60, %49, %cst_55 {dimension_numbers = #tpu.dot_dimension_numbers<[1], [0], [0], [1], [0, 0, 1, 1], [], []>} : vector<16x3xbf16>, vector<3x32xbf16>, vector<16x32xf32> -> vector<16x32xf32>
    %62 = arith.addf %47, %61 : vector<16x32xf32>
    %c1_56 = arith.constant 1 : index
    %c1_57 = arith.constant 1 : index
    %c0_58 = arith.constant 0 : index
    %c0_59 = arith.constant 0 : index
    %63 = vector.load %arg3[%c1_56, %c1_57, %c0_58, %c0_59] : memref<3x3x3x32xbf16, #tpu.memory_space<vmem>>, vector<1x1x3x32xbf16>
    %64 = vector.shape_cast %63 : vector<1x1x3x32xbf16> to vector<3x32xbf16>
    %c1_i32_60 = arith.constant 1 : i32
    %65 = arith.addi %0, %c1_i32_60 : i32
    %c0_61 = arith.constant 0 : index
    %66 = arith.index_cast %65 : i32 to index
    %c1_62 = arith.constant 1 : index
    %c0_63 = arith.constant 0 : index
    %67 = vector.load %arg2[%c0_61, %66, %c1_62, %c0_63] : memref<1x18x18x3xbf16, #tpu.memory_space<vmem>>, vector<1x1x16x3xbf16>
    %68 = vector.shape_cast %67 : vector<1x1x16x3xbf16> to vector<16x3xbf16>
    %cst_64 = arith.constant dense<0.000000e+00> : vector<16x32xf32>
    %69 = tpu.matmul %68, %64, %cst_64 {dimension_numbers = #tpu.dot_dimension_numbers<[1], [0], [0], [1], [0, 0, 1, 1], [], []>} : vector<16x3xbf16>, vector<3x32xbf16>, vector<16x32xf32> -> vector<16x32xf32>
    %70 = arith.addf %55, %69 : vector<16x32xf32>
    %c1_i32_65 = arith.constant 1 : i32
    %71 = arith.addi %0, %c1_i32_65 : i32
    %c1_i32_66 = arith.constant 1 : i32
    %72 = arith.addi %71, %c1_i32_66 : i32
    %c0_67 = arith.constant 0 : index
    %73 = arith.index_cast %72 : i32 to index
    %c1_68 = arith.constant 1 : index
    %c0_69 = arith.constant 0 : index
    %74 = vector.load %arg2[%c0_67, %73, %c1_68, %c0_69] : memref<1x18x18x3xbf16, #tpu.memory_space<vmem>>, vector<1x1x16x3xbf16>
    %75 = vector.shape_cast %74 : vector<1x1x16x3xbf16> to vector<16x3xbf16>
    %cst_70 = arith.constant dense<0.000000e+00> : vector<16x32xf32>
    %76 = tpu.matmul %75, %64, %cst_70 {dimension_numbers = #tpu.dot_dimension_numbers<[1], [0], [0], [1], [0, 0, 1, 1], [], []>} : vector<16x3xbf16>, vector<3x32xbf16>, vector<16x32xf32> -> vector<16x32xf32>
    %77 = arith.addf %62, %76 : vector<16x32xf32>
    %c1_71 = arith.constant 1 : index
    %c2_72 = arith.constant 2 : index
    %c0_73 = arith.constant 0 : index
    %c0_74 = arith.constant 0 : index
    %78 = vector.load %arg3[%c1_71, %c2_72, %c0_73, %c0_74] : memref<3x3x3x32xbf16, #tpu.memory_space<vmem>>, vector<1x1x3x32xbf16>
    %79 = vector.shape_cast %78 : vector<1x1x3x32xbf16> to vector<3x32xbf16>
    %c1_i32_75 = arith.constant 1 : i32
    %80 = arith.addi %0, %c1_i32_75 : i32
    %c0_76 = arith.constant 0 : index
    %81 = arith.index_cast %80 : i32 to index
    %c2_77 = arith.constant 2 : index
    %c0_78 = arith.constant 0 : index
    %82 = vector.load %arg2[%c0_76, %81, %c2_77, %c0_78] : memref<1x18x18x3xbf16, #tpu.memory_space<vmem>>, vector<1x1x16x3xbf16>
    %83 = vector.shape_cast %82 : vector<1x1x16x3xbf16> to vector<16x3xbf16>
    %cst_79 = arith.constant dense<0.000000e+00> : vector<16x32xf32>
    %84 = tpu.matmul %83, %79, %cst_79 {dimension_numbers = #tpu.dot_dimension_numbers<[1], [0], [0], [1], [0, 0, 1, 1], [], []>} : vector<16x3xbf16>, vector<3x32xbf16>, vector<16x32xf32> -> vector<16x32xf32>
    %85 = arith.addf %70, %84 : vector<16x32xf32>
    %c1_i32_80 = arith.constant 1 : i32
    %86 = arith.addi %0, %c1_i32_80 : i32
    %c1_i32_81 = arith.constant 1 : i32
    %87 = arith.addi %86, %c1_i32_81 : i32
    %c0_82 = arith.constant 0 : index
    %88 = arith.index_cast %87 : i32 to index
    %c2_83 = arith.constant 2 : index
    %c0_84 = arith.constant 0 : index
    %89 = vector.load %arg2[%c0_82, %88, %c2_83, %c0_84] : memref<1x18x18x3xbf16, #tpu.memory_space<vmem>>, vector<1x1x16x3xbf16>
    %90 = vector.shape_cast %89 : vector<1x1x16x3xbf16> to vector<16x3xbf16>
    %cst_85 = arith.constant dense<0.000000e+00> : vector<16x32xf32>
    %91 = tpu.matmul %90, %79, %cst_85 {dimension_numbers = #tpu.dot_dimension_numbers<[1], [0], [0], [1], [0, 0, 1, 1], [], []>} : vector<16x3xbf16>, vector<3x32xbf16>, vector<16x32xf32> -> vector<16x32xf32>
    %92 = arith.addf %77, %91 : vector<16x32xf32>
    %c2_86 = arith.constant 2 : index
    %c0_87 = arith.constant 0 : index
    %c0_88 = arith.constant 0 : index
    %c0_89 = arith.constant 0 : index
    %93 = vector.load %arg3[%c2_86, %c0_87, %c0_88, %c0_89] : memref<3x3x3x32xbf16, #tpu.memory_space<vmem>>, vector<1x1x3x32xbf16>
    %94 = vector.shape_cast %93 : vector<1x1x3x32xbf16> to vector<3x32xbf16>
    %c2_i32_90 = arith.constant 2 : i32
    %95 = arith.addi %0, %c2_i32_90 : i32
    %c0_91 = arith.constant 0 : index
    %96 = arith.index_cast %95 : i32 to index
    %c0_92 = arith.constant 0 : index
    %c0_93 = arith.constant 0 : index
    %97 = vector.load %arg2[%c0_91, %96, %c0_92, %c0_93] : memref<1x18x18x3xbf16, #tpu.memory_space<vmem>>, vector<1x1x16x3xbf16>
    %98 = vector.shape_cast %97 : vector<1x1x16x3xbf16> to vector<16x3xbf16>
    %cst_94 = arith.constant dense<0.000000e+00> : vector<16x32xf32>
    %99 = tpu.matmul %98, %94, %cst_94 {dimension_numbers = #tpu.dot_dimension_numbers<[1], [0], [0], [1], [0, 0, 1, 1], [], []>} : vector<16x3xbf16>, vector<3x32xbf16>, vector<16x32xf32> -> vector<16x32xf32>
    %100 = arith.addf %85, %99 : vector<16x32xf32>
    %c2_i32_95 = arith.constant 2 : i32
    %101 = arith.addi %0, %c2_i32_95 : i32
    %c1_i32_96 = arith.constant 1 : i32
    %102 = arith.addi %101, %c1_i32_96 : i32
    %c0_97 = arith.constant 0 : index
    %103 = arith.index_cast %102 : i32 to index
    %c0_98 = arith.constant 0 : index
    %c0_99 = arith.constant 0 : index
    %104 = vector.load %arg2[%c0_97, %103, %c0_98, %c0_99] : memref<1x18x18x3xbf16, #tpu.memory_space<vmem>>, vector<1x1x16x3xbf16>
    %105 = vector.shape_cast %104 : vector<1x1x16x3xbf16> to vector<16x3xbf16>
    %cst_100 = arith.constant dense<0.000000e+00> : vector<16x32xf32>
    %106 = tpu.matmul %105, %94, %cst_100 {dimension_numbers = #tpu.dot_dimension_numbers<[1], [0], [0], [1], [0, 0, 1, 1], [], []>} : vector<16x3xbf16>, vector<3x32xbf16>, vector<16x32xf32> -> vector<16x32xf32>
    %107 = arith.addf %92, %106 : vector<16x32xf32>
    %c2_101 = arith.constant 2 : index
    %c1_102 = arith.constant 1 : index
    %c0_103 = arith.constant 0 : index
    %c0_104 = arith.constant 0 : index
    %108 = vector.load %arg3[%c2_101, %c1_102, %c0_103, %c0_104] : memref<3x3x3x32xbf16, #tpu.memory_space<vmem>>, vector<1x1x3x32xbf16>
    %109 = vector.shape_cast %108 : vector<1x1x3x32xbf16> to vector<3x32xbf16>
    %c2_i32_105 = arith.constant 2 : i32
    %110 = arith.addi %0, %c2_i32_105 : i32
    %c0_106 = arith.constant 0 : index
    %111 = arith.index_cast %110 : i32 to index
    %c1_107 = arith.constant 1 : index
    %c0_108 = arith.constant 0 : index
    %112 = vector.load %arg2[%c0_106, %111, %c1_107, %c0_108] : memref<1x18x18x3xbf16, #tpu.memory_space<vmem>>, vector<1x1x16x3xbf16>
    %113 = vector.shape_cast %112 : vector<1x1x16x3xbf16> to vector<16x3xbf16>
    %cst_109 = arith.constant dense<0.000000e+00> : vector<16x32xf32>
    %114 = tpu.matmul %113, %109, %cst_109 {dimension_numbers = #tpu.dot_dimension_numbers<[1], [0], [0], [1], [0, 0, 1, 1], [], []>} : vector<16x3xbf16>, vector<3x32xbf16>, vector<16x32xf32> -> vector<16x32xf32>
    %115 = arith.addf %100, %114 : vector<16x32xf32>
    %c2_i32_110 = arith.constant 2 : i32
    %116 = arith.addi %0, %c2_i32_110 : i32
    %c1_i32_111 = arith.constant 1 : i32
    %117 = arith.addi %116, %c1_i32_111 : i32
    %c0_112 = arith.constant 0 : index
    %118 = arith.index_cast %117 : i32 to index
    %c1_113 = arith.constant 1 : index
    %c0_114 = arith.constant 0 : index
    %119 = vector.load %arg2[%c0_112, %118, %c1_113, %c0_114] : memref<1x18x18x3xbf16, #tpu.memory_space<vmem>>, vector<1x1x16x3xbf16>
    %120 = vector.shape_cast %119 : vector<1x1x16x3xbf16> to vector<16x3xbf16>
    %cst_115 = arith.constant dense<0.000000e+00> : vector<16x32xf32>
    %121 = tpu.matmul %120, %109, %cst_115 {dimension_numbers = #tpu.dot_dimension_numbers<[1], [0], [0], [1], [0, 0, 1, 1], [], []>} : vector<16x3xbf16>, vector<3x32xbf16>, vector<16x32xf32> -> vector<16x32xf32>
    %122 = arith.addf %107, %121 : vector<16x32xf32>
    %c2_116 = arith.constant 2 : index
    %c2_117 = arith.constant 2 : index
    %c0_118 = arith.constant 0 : index
    %c0_119 = arith.constant 0 : index
    %123 = vector.load %arg3[%c2_116, %c2_117, %c0_118, %c0_119] : memref<3x3x3x32xbf16, #tpu.memory_space<vmem>>, vector<1x1x3x32xbf16>
    %124 = vector.shape_cast %123 : vector<1x1x3x32xbf16> to vector<3x32xbf16>
    %c2_i32_120 = arith.constant 2 : i32
    %125 = arith.addi %0, %c2_i32_120 : i32
    %c0_121 = arith.constant 0 : index
    %126 = arith.index_cast %125 : i32 to index
    %c2_122 = arith.constant 2 : index
    %c0_123 = arith.constant 0 : index
    %127 = vector.load %arg2[%c0_121, %126, %c2_122, %c0_123] : memref<1x18x18x3xbf16, #tpu.memory_space<vmem>>, vector<1x1x16x3xbf16>
    %128 = vector.shape_cast %127 : vector<1x1x16x3xbf16> to vector<16x3xbf16>
    %cst_124 = arith.constant dense<0.000000e+00> : vector<16x32xf32>
    %129 = tpu.matmul %128, %124, %cst_124 {dimension_numbers = #tpu.dot_dimension_numbers<[1], [0], [0], [1], [0, 0, 1, 1], [], []>} : vector<16x3xbf16>, vector<3x32xbf16>, vector<16x32xf32> -> vector<16x32xf32>
    %130 = arith.addf %115, %129 : vector<16x32xf32>
    %c2_i32_125 = arith.constant 2 : i32
    %131 = arith.addi %0, %c2_i32_125 : i32
    %c1_i32_126 = arith.constant 1 : i32
    %132 = arith.addi %131, %c1_i32_126 : i32
    %c0_127 = arith.constant 0 : index
    %133 = arith.index_cast %132 : i32 to index
    %c2_128 = arith.constant 2 : index
    %c0_129 = arith.constant 0 : index
    %134 = vector.load %arg2[%c0_127, %133, %c2_128, %c0_129] : memref<1x18x18x3xbf16, #tpu.memory_space<vmem>>, vector<1x1x16x3xbf16>
    %135 = vector.shape_cast %134 : vector<1x1x16x3xbf16> to vector<16x3xbf16>
    %cst_130 = arith.constant dense<0.000000e+00> : vector<16x32xf32>
    %136 = tpu.matmul %135, %124, %cst_130 {dimension_numbers = #tpu.dot_dimension_numbers<[1], [0], [0], [1], [0, 0, 1, 1], [], []>} : vector<16x3xbf16>, vector<3x32xbf16>, vector<16x32xf32> -> vector<16x32xf32>
    %137 = arith.addf %122, %136 : vector<16x32xf32>
    %c0_131 = arith.constant 0 : index
    %c0_132 = arith.constant 0 : index
    %138 = vector.load %arg4[%c0_131, %c0_132] : memref<1x32xf32, #tpu.memory_space<vmem>>, vector<1x32xf32>
    %139 = vector.broadcast %138 : vector<1x32xf32> to vector<16x32xf32>
    %140 = arith.addf %130, %139 : vector<16x32xf32>
    %cst_133 = arith.constant 0.000000e+00 : f32
    %141 = vector.broadcast %cst_133 : f32 to vector<16x32xf32>
    %142 = arith.maximumf %140, %141 : vector<16x32xf32>
    %143 = vector.broadcast %138 : vector<1x32xf32> to vector<16x32xf32>
    %144 = arith.addf %137, %143 : vector<16x32xf32>
    %cst_134 = arith.constant 0.000000e+00 : f32
    %145 = vector.broadcast %cst_134 : f32 to vector<16x32xf32>
    %146 = arith.maximumf %144, %145 : vector<16x32xf32>
    %147 = arith.maximumf %142, %146 : vector<16x32xf32>
    %c0_135 = arith.constant 0 : index
    %c0_136 = arith.constant 0 : index
    %148 = vector.load %arg6[%c0_135, %c0_136] : memref<16x32xf32, #tpu.memory_space<vmem>>, vector<16x32xf32>
    tpu.vector_store %arg6[%c0_135, %c0_136], %147 {strides = array<i32>} : memref<16x32xf32, #tpu.memory_space<vmem>>, vector<16x32xf32>,
    %c0_137 = arith.constant 0 : index
    %c0_138 = arith.constant 0 : index
    %149 = tpu.strided_load %arg6[%c0_137, %c0_138] {strides = array<i32: 2, 1>} : memref<16x32xf32, #tpu.memory_space<vmem>>, vector<8x32xf32>
    %c1_139 = arith.constant 1 : index
    %c0_140 = arith.constant 0 : index
    %150 = tpu.strided_load %arg6[%c1_139, %c0_140] {strides = array<i32: 2, 1>} : memref<16x32xf32, #tpu.memory_space<vmem>>, vector<8x32xf32>
    %151 = arith.maximumf %149, %150 : vector<8x32xf32>
    %152 = arith.truncf %151 : vector<8x32xf32> to vector<8x32xbf16>
    %c0_141 = arith.constant 0 : index
    %c0_142 = arith.constant 0 : index
    %c0_143 = arith.constant 0 : index
    %c0_144 = arith.constant 0 : index
    %153 = vector.load %arg5[%c0_141, %c0_142, %c0_143, %c0_144] : memref<1x1x8x32xbf16, #tpu.memory_space<vmem>>, vector<1x1x8x32xbf16>
    %154 = vector.shape_cast %153 : vector<1x1x8x32xbf16> to vector<8x32xbf16>
    %155 = vector.shape_cast %152 : vector<8x32xbf16> to vector<1x1x8x32xbf16>
    tpu.vector_store %arg5[%c0_141, %c0_142, %c0_143, %c0_144], %155 {strides = array<i32>} : memref<1x1x8x32xbf16, #tpu.memory_space<vmem>>, vector<1x1x8x32xbf16>,
    return
  }
  func.func @transform_0(%arg0: i32, %arg1: i32) -> (i32, i32, i32, i32) {
    %c0_i32 = arith.constant 0 : i32
    %c0_i32_0 = arith.constant 0 : i32
    %c0_i32_1 = arith.constant 0 : i32
    %c0_i32_2 = arith.constant 0 : i32
    return %arg0, %c0_i32, %c0_i32_0, %c0_i32_1 : i32, i32, i32, i32
  }
  func.func @transform_1(%arg0: i32, %arg1: i32) -> (i32, i32, i32, i32) {
    %c0_i32 = arith.constant 0 : i32
    %c0_i32_0 = arith.constant 0 : i32
    %c0_i32_1 = arith.constant 0 : i32
    %c0_i32_2 = arith.constant 0 : i32
    %c0_i32_3 = arith.constant 0 : i32
    return %c0_i32, %c0_i32_0, %c0_i32_1, %c0_i32_2 : i32, i32, i32, i32
  }
  func.func @transform_2(%arg0: i32, %arg1: i32) -> (i32, i32) {
    %c0_i32 = arith.constant 0 : i32
    %c0_i32_0 = arith.constant 0 : i32
    %c0_i32_1 = arith.constant 0 : i32
    return %c0_i32, %c0_i32_0 : i32, i32
  }
  func.func @transform_3(%arg0: i32, %arg1: i32) -> (i32, i32, i32, i32) {
    %c0_i32 = arith.constant 0 : i32
    %c0_i32_0 = arith.constant 0 : i32
    %c0_i32_1 = arith.constant 0 : i32
    return %arg0, %arg1, %c0_i32, %c0_i32_0 : i32, i32, i32, i32
  }
}

module attributes {stable_mosaic.version = 11 : i64} {
  func.func @_conv3x3_relu_pool_kernel(%arg0: i32, %arg1: i32, %arg2: memref<1x10x10x32xbf16, #tpu.memory_space<vmem>>, %arg3: memref<3x3x32x64xbf16, #tpu.memory_space<vmem>>, %arg4: memref<1x64xf32, #tpu.memory_space<vmem>>, %arg5: memref<1x1x4x64xbf16, #tpu.memory_space<vmem>>, %arg6: memref<8x64xf32, #tpu.memory_space<vmem>>) attributes {dimension_semantics = [#tpu.dimension_semantics<parallel>, #tpu.dimension_semantics<parallel>], iteration_bounds = array<i64: 2, 4>, scalar_prefetch = 0 : i64, scratch_operands = 1 : i64, tpu.core_type = #tpu.core_type<tc>, window_params = [{transform_indices = @transform_0, window_bounds = array<i64: 1, 10, 10, 32>}, {pipeline_mode = #tpu.pipeline_mode<synchronous>, transform_indices = @transform_1, window_bounds = array<i64: 3, 3, 32, 64>}, {pipeline_mode = #tpu.pipeline_mode<synchronous>, transform_indices = @transform_2, window_bounds = array<i64: 1, 64>}, {transform_indices = @transform_3, window_bounds = array<i64: 1, 1, 4, 64>}]} {
    %c2_i32 = arith.constant 2 : i32
    %0 = arith.muli %c2_i32, %arg1 : i32
    %cst = arith.constant 0.000000e+00 : f32
    %1 = vector.broadcast %cst : f32 to vector<8x64xf32>
    %cst_0 = arith.constant 0.000000e+00 : f32
    %2 = vector.broadcast %cst_0 : f32 to vector<8x64xf32>
    %c0 = arith.constant 0 : index
    %c0_1 = arith.constant 0 : index
    %c0_2 = arith.constant 0 : index
    %c0_3 = arith.constant 0 : index
    %3 = vector.load %arg3[%c0, %c0_1, %c0_2, %c0_3] : memref<3x3x32x64xbf16, #tpu.memory_space<vmem>>, vector<1x1x32x64xbf16>
    %4 = vector.shape_cast %3 : vector<1x1x32x64xbf16> to vector<32x64xbf16>
    %c0_i32 = arith.constant 0 : i32
    %5 = arith.addi %0, %c0_i32 : i32
    %c0_4 = arith.constant 0 : index
    %6 = arith.index_cast %5 : i32 to index
    %c0_5 = arith.constant 0 : index
    %c0_6 = arith.constant 0 : index
    %7 = vector.load %arg2[%c0_4, %6, %c0_5, %c0_6] : memref<1x10x10x32xbf16, #tpu.memory_space<vmem>>, vector<1x1x8x32xbf16>
    %8 = vector.shape_cast %7 : vector<1x1x8x32xbf16> to vector<8x32xbf16>
    %cst_7 = arith.constant dense<0.000000e+00> : vector<8x64xf32>
    %9 = tpu.matmul %8, %4, %cst_7 {dimension_numbers = #tpu.dot_dimension_numbers<[1], [0], [0], [1], [0, 0, 1, 1], [], []>} : vector<8x32xbf16>, vector<32x64xbf16>, vector<8x64xf32> -> vector<8x64xf32>
    %10 = arith.addf %1, %9 : vector<8x64xf32>
    %c0_i32_8 = arith.constant 0 : i32
    %11 = arith.addi %0, %c0_i32_8 : i32
    %c1_i32 = arith.constant 1 : i32
    %12 = arith.addi %11, %c1_i32 : i32
    %c0_9 = arith.constant 0 : index
    %13 = arith.index_cast %12 : i32 to index
    %c0_10 = arith.constant 0 : index
    %c0_11 = arith.constant 0 : index
    %14 = vector.load %arg2[%c0_9, %13, %c0_10, %c0_11] : memref<1x10x10x32xbf16, #tpu.memory_space<vmem>>, vector<1x1x8x32xbf16>
    %15 = vector.shape_cast %14 : vector<1x1x8x32xbf16> to vector<8x32xbf16>
    %cst_12 = arith.constant dense<0.000000e+00> : vector<8x64xf32>
    %16 = tpu.matmul %15, %4, %cst_12 {dimension_numbers = #tpu.dot_dimension_numbers<[1], [0], [0], [1], [0, 0, 1, 1], [], []>} : vector<8x32xbf16>, vector<32x64xbf16>, vector<8x64xf32> -> vector<8x64xf32>
    %17 = arith.addf %2, %16 : vector<8x64xf32>
    %c0_13 = arith.constant 0 : index
    %c1 = arith.constant 1 : index
    %c0_14 = arith.constant 0 : index
    %c0_15 = arith.constant 0 : index
    %18 = vector.load %arg3[%c0_13, %c1, %c0_14, %c0_15] : memref<3x3x32x64xbf16, #tpu.memory_space<vmem>>, vector<1x1x32x64xbf16>
    %19 = vector.shape_cast %18 : vector<1x1x32x64xbf16> to vector<32x64xbf16>
    %c0_i32_16 = arith.constant 0 : i32
    %20 = arith.addi %0, %c0_i32_16 : i32
    %c0_17 = arith.constant 0 : index
    %21 = arith.index_cast %20 : i32 to index
    %c1_18 = arith.constant 1 : index
    %c0_19 = arith.constant 0 : index
    %22 = vector.load %arg2[%c0_17, %21, %c1_18, %c0_19] : memref<1x10x10x32xbf16, #tpu.memory_space<vmem>>, vector<1x1x8x32xbf16>
    %23 = vector.shape_cast %22 : vector<1x1x8x32xbf16> to vector<8x32xbf16>
    %cst_20 = arith.constant dense<0.000000e+00> : vector<8x64xf32>
    %24 = tpu.matmul %23, %19, %cst_20 {dimension_numbers = #tpu.dot_dimension_numbers<[1], [0], [0], [1], [0, 0, 1, 1], [], []>} : vector<8x32xbf16>, vector<32x64xbf16>, vector<8x64xf32> -> vector<8x64xf32>
    %25 = arith.addf %10, %24 : vector<8x64xf32>
    %c0_i32_21 = arith.constant 0 : i32
    %26 = arith.addi %0, %c0_i32_21 : i32
    %c1_i32_22 = arith.constant 1 : i32
    %27 = arith.addi %26, %c1_i32_22 : i32
    %c0_23 = arith.constant 0 : index
    %28 = arith.index_cast %27 : i32 to index
    %c1_24 = arith.constant 1 : index
    %c0_25 = arith.constant 0 : index
    %29 = vector.load %arg2[%c0_23, %28, %c1_24, %c0_25] : memref<1x10x10x32xbf16, #tpu.memory_space<vmem>>, vector<1x1x8x32xbf16>
    %30 = vector.shape_cast %29 : vector<1x1x8x32xbf16> to vector<8x32xbf16>
    %cst_26 = arith.constant dense<0.000000e+00> : vector<8x64xf32>
    %31 = tpu.matmul %30, %19, %cst_26 {dimension_numbers = #tpu.dot_dimension_numbers<[1], [0], [0], [1], [0, 0, 1, 1], [], []>} : vector<8x32xbf16>, vector<32x64xbf16>, vector<8x64xf32> -> vector<8x64xf32>
    %32 = arith.addf %17, %31 : vector<8x64xf32>
    %c0_27 = arith.constant 0 : index
    %c2 = arith.constant 2 : index
    %c0_28 = arith.constant 0 : index
    %c0_29 = arith.constant 0 : index
    %33 = vector.load %arg3[%c0_27, %c2, %c0_28, %c0_29] : memref<3x3x32x64xbf16, #tpu.memory_space<vmem>>, vector<1x1x32x64xbf16>
    %34 = vector.shape_cast %33 : vector<1x1x32x64xbf16> to vector<32x64xbf16>
    %c0_i32_30 = arith.constant 0 : i32
    %35 = arith.addi %0, %c0_i32_30 : i32
    %c0_31 = arith.constant 0 : index
    %36 = arith.index_cast %35 : i32 to index
    %c2_32 = arith.constant 2 : index
    %c0_33 = arith.constant 0 : index
    %37 = vector.load %arg2[%c0_31, %36, %c2_32, %c0_33] : memref<1x10x10x32xbf16, #tpu.memory_space<vmem>>, vector<1x1x8x32xbf16>
    %38 = vector.shape_cast %37 : vector<1x1x8x32xbf16> to vector<8x32xbf16>
    %cst_34 = arith.constant dense<0.000000e+00> : vector<8x64xf32>
    %39 = tpu.matmul %38, %34, %cst_34 {dimension_numbers = #tpu.dot_dimension_numbers<[1], [0], [0], [1], [0, 0, 1, 1], [], []>} : vector<8x32xbf16>, vector<32x64xbf16>, vector<8x64xf32> -> vector<8x64xf32>
    %40 = arith.addf %25, %39 : vector<8x64xf32>
    %c0_i32_35 = arith.constant 0 : i32
    %41 = arith.addi %0, %c0_i32_35 : i32
    %c1_i32_36 = arith.constant 1 : i32
    %42 = arith.addi %41, %c1_i32_36 : i32
    %c0_37 = arith.constant 0 : index
    %43 = arith.index_cast %42 : i32 to index
    %c2_38 = arith.constant 2 : index
    %c0_39 = arith.constant 0 : index
    %44 = vector.load %arg2[%c0_37, %43, %c2_38, %c0_39] : memref<1x10x10x32xbf16, #tpu.memory_space<vmem>>, vector<1x1x8x32xbf16>
    %45 = vector.shape_cast %44 : vector<1x1x8x32xbf16> to vector<8x32xbf16>
    %cst_40 = arith.constant dense<0.000000e+00> : vector<8x64xf32>
    %46 = tpu.matmul %45, %34, %cst_40 {dimension_numbers = #tpu.dot_dimension_numbers<[1], [0], [0], [1], [0, 0, 1, 1], [], []>} : vector<8x32xbf16>, vector<32x64xbf16>, vector<8x64xf32> -> vector<8x64xf32>
    %47 = arith.addf %32, %46 : vector<8x64xf32>
    %c1_41 = arith.constant 1 : index
    %c0_42 = arith.constant 0 : index
    %c0_43 = arith.constant 0 : index
    %c0_44 = arith.constant 0 : index
    %48 = vector.load %arg3[%c1_41, %c0_42, %c0_43, %c0_44] : memref<3x3x32x64xbf16, #tpu.memory_space<vmem>>, vector<1x1x32x64xbf16>
    %49 = vector.shape_cast %48 : vector<1x1x32x64xbf16> to vector<32x64xbf16>
    %c1_i32_45 = arith.constant 1 : i32
    %50 = arith.addi %0, %c1_i32_45 : i32
    %c0_46 = arith.constant 0 : index
    %51 = arith.index_cast %50 : i32 to index
    %c0_47 = arith.constant 0 : index
    %c0_48 = arith.constant 0 : index
    %52 = vector.load %arg2[%c0_46, %51, %c0_47, %c0_48] : memref<1x10x10x32xbf16, #tpu.memory_space<vmem>>, vector<1x1x8x32xbf16>
    %53 = vector.shape_cast %52 : vector<1x1x8x32xbf16> to vector<8x32xbf16>
    %cst_49 = arith.constant dense<0.000000e+00> : vector<8x64xf32>
    %54 = tpu.matmul %53, %49, %cst_49 {dimension_numbers = #tpu.dot_dimension_numbers<[1], [0], [0], [1], [0, 0, 1, 1], [], []>} : vector<8x32xbf16>, vector<32x64xbf16>, vector<8x64xf32> -> vector<8x64xf32>
    %55 = arith.addf %40, %54 : vector<8x64xf32>
    %c1_i32_50 = arith.constant 1 : i32
    %56 = arith.addi %0, %c1_i32_50 : i32
    %c1_i32_51 = arith.constant 1 : i32
    %57 = arith.addi %56, %c1_i32_51 : i32
    %c0_52 = arith.constant 0 : index
    %58 = arith.index_cast %57 : i32 to index
    %c0_53 = arith.constant 0 : index
    %c0_54 = arith.constant 0 : index
    %59 = vector.load %arg2[%c0_52, %58, %c0_53, %c0_54] : memref<1x10x10x32xbf16, #tpu.memory_space<vmem>>, vector<1x1x8x32xbf16>
    %60 = vector.shape_cast %59 : vector<1x1x8x32xbf16> to vector<8x32xbf16>
    %cst_55 = arith.constant dense<0.000000e+00> : vector<8x64xf32>
    %61 = tpu.matmul %60, %49, %cst_55 {dimension_numbers = #tpu.dot_dimension_numbers<[1], [0], [0], [1], [0, 0, 1, 1], [], []>} : vector<8x32xbf16>, vector<32x64xbf16>, vector<8x64xf32> -> vector<8x64xf32>
    %62 = arith.addf %47, %61 : vector<8x64xf32>
    %c1_56 = arith.constant 1 : index
    %c1_57 = arith.constant 1 : index
    %c0_58 = arith.constant 0 : index
    %c0_59 = arith.constant 0 : index
    %63 = vector.load %arg3[%c1_56, %c1_57, %c0_58, %c0_59] : memref<3x3x32x64xbf16, #tpu.memory_space<vmem>>, vector<1x1x32x64xbf16>
    %64 = vector.shape_cast %63 : vector<1x1x32x64xbf16> to vector<32x64xbf16>
    %c1_i32_60 = arith.constant 1 : i32
    %65 = arith.addi %0, %c1_i32_60 : i32
    %c0_61 = arith.constant 0 : index
    %66 = arith.index_cast %65 : i32 to index
    %c1_62 = arith.constant 1 : index
    %c0_63 = arith.constant 0 : index
    %67 = vector.load %arg2[%c0_61, %66, %c1_62, %c0_63] : memref<1x10x10x32xbf16, #tpu.memory_space<vmem>>, vector<1x1x8x32xbf16>
    %68 = vector.shape_cast %67 : vector<1x1x8x32xbf16> to vector<8x32xbf16>
    %cst_64 = arith.constant dense<0.000000e+00> : vector<8x64xf32>
    %69 = tpu.matmul %68, %64, %cst_64 {dimension_numbers = #tpu.dot_dimension_numbers<[1], [0], [0], [1], [0, 0, 1, 1], [], []>} : vector<8x32xbf16>, vector<32x64xbf16>, vector<8x64xf32> -> vector<8x64xf32>
    %70 = arith.addf %55, %69 : vector<8x64xf32>
    %c1_i32_65 = arith.constant 1 : i32
    %71 = arith.addi %0, %c1_i32_65 : i32
    %c1_i32_66 = arith.constant 1 : i32
    %72 = arith.addi %71, %c1_i32_66 : i32
    %c0_67 = arith.constant 0 : index
    %73 = arith.index_cast %72 : i32 to index
    %c1_68 = arith.constant 1 : index
    %c0_69 = arith.constant 0 : index
    %74 = vector.load %arg2[%c0_67, %73, %c1_68, %c0_69] : memref<1x10x10x32xbf16, #tpu.memory_space<vmem>>, vector<1x1x8x32xbf16>
    %75 = vector.shape_cast %74 : vector<1x1x8x32xbf16> to vector<8x32xbf16>
    %cst_70 = arith.constant dense<0.000000e+00> : vector<8x64xf32>
    %76 = tpu.matmul %75, %64, %cst_70 {dimension_numbers = #tpu.dot_dimension_numbers<[1], [0], [0], [1], [0, 0, 1, 1], [], []>} : vector<8x32xbf16>, vector<32x64xbf16>, vector<8x64xf32> -> vector<8x64xf32>
    %77 = arith.addf %62, %76 : vector<8x64xf32>
    %c1_71 = arith.constant 1 : index
    %c2_72 = arith.constant 2 : index
    %c0_73 = arith.constant 0 : index
    %c0_74 = arith.constant 0 : index
    %78 = vector.load %arg3[%c1_71, %c2_72, %c0_73, %c0_74] : memref<3x3x32x64xbf16, #tpu.memory_space<vmem>>, vector<1x1x32x64xbf16>
    %79 = vector.shape_cast %78 : vector<1x1x32x64xbf16> to vector<32x64xbf16>
    %c1_i32_75 = arith.constant 1 : i32
    %80 = arith.addi %0, %c1_i32_75 : i32
    %c0_76 = arith.constant 0 : index
    %81 = arith.index_cast %80 : i32 to index
    %c2_77 = arith.constant 2 : index
    %c0_78 = arith.constant 0 : index
    %82 = vector.load %arg2[%c0_76, %81, %c2_77, %c0_78] : memref<1x10x10x32xbf16, #tpu.memory_space<vmem>>, vector<1x1x8x32xbf16>
    %83 = vector.shape_cast %82 : vector<1x1x8x32xbf16> to vector<8x32xbf16>
    %cst_79 = arith.constant dense<0.000000e+00> : vector<8x64xf32>
    %84 = tpu.matmul %83, %79, %cst_79 {dimension_numbers = #tpu.dot_dimension_numbers<[1], [0], [0], [1], [0, 0, 1, 1], [], []>} : vector<8x32xbf16>, vector<32x64xbf16>, vector<8x64xf32> -> vector<8x64xf32>
    %85 = arith.addf %70, %84 : vector<8x64xf32>
    %c1_i32_80 = arith.constant 1 : i32
    %86 = arith.addi %0, %c1_i32_80 : i32
    %c1_i32_81 = arith.constant 1 : i32
    %87 = arith.addi %86, %c1_i32_81 : i32
    %c0_82 = arith.constant 0 : index
    %88 = arith.index_cast %87 : i32 to index
    %c2_83 = arith.constant 2 : index
    %c0_84 = arith.constant 0 : index
    %89 = vector.load %arg2[%c0_82, %88, %c2_83, %c0_84] : memref<1x10x10x32xbf16, #tpu.memory_space<vmem>>, vector<1x1x8x32xbf16>
    %90 = vector.shape_cast %89 : vector<1x1x8x32xbf16> to vector<8x32xbf16>
    %cst_85 = arith.constant dense<0.000000e+00> : vector<8x64xf32>
    %91 = tpu.matmul %90, %79, %cst_85 {dimension_numbers = #tpu.dot_dimension_numbers<[1], [0], [0], [1], [0, 0, 1, 1], [], []>} : vector<8x32xbf16>, vector<32x64xbf16>, vector<8x64xf32> -> vector<8x64xf32>
    %92 = arith.addf %77, %91 : vector<8x64xf32>
    %c2_86 = arith.constant 2 : index
    %c0_87 = arith.constant 0 : index
    %c0_88 = arith.constant 0 : index
    %c0_89 = arith.constant 0 : index
    %93 = vector.load %arg3[%c2_86, %c0_87, %c0_88, %c0_89] : memref<3x3x32x64xbf16, #tpu.memory_space<vmem>>, vector<1x1x32x64xbf16>
    %94 = vector.shape_cast %93 : vector<1x1x32x64xbf16> to vector<32x64xbf16>
    %c2_i32_90 = arith.constant 2 : i32
    %95 = arith.addi %0, %c2_i32_90 : i32
    %c0_91 = arith.constant 0 : index
    %96 = arith.index_cast %95 : i32 to index
    %c0_92 = arith.constant 0 : index
    %c0_93 = arith.constant 0 : index
    %97 = vector.load %arg2[%c0_91, %96, %c0_92, %c0_93] : memref<1x10x10x32xbf16, #tpu.memory_space<vmem>>, vector<1x1x8x32xbf16>
    %98 = vector.shape_cast %97 : vector<1x1x8x32xbf16> to vector<8x32xbf16>
    %cst_94 = arith.constant dense<0.000000e+00> : vector<8x64xf32>
    %99 = tpu.matmul %98, %94, %cst_94 {dimension_numbers = #tpu.dot_dimension_numbers<[1], [0], [0], [1], [0, 0, 1, 1], [], []>} : vector<8x32xbf16>, vector<32x64xbf16>, vector<8x64xf32> -> vector<8x64xf32>
    %100 = arith.addf %85, %99 : vector<8x64xf32>
    %c2_i32_95 = arith.constant 2 : i32
    %101 = arith.addi %0, %c2_i32_95 : i32
    %c1_i32_96 = arith.constant 1 : i32
    %102 = arith.addi %101, %c1_i32_96 : i32
    %c0_97 = arith.constant 0 : index
    %103 = arith.index_cast %102 : i32 to index
    %c0_98 = arith.constant 0 : index
    %c0_99 = arith.constant 0 : index
    %104 = vector.load %arg2[%c0_97, %103, %c0_98, %c0_99] : memref<1x10x10x32xbf16, #tpu.memory_space<vmem>>, vector<1x1x8x32xbf16>
    %105 = vector.shape_cast %104 : vector<1x1x8x32xbf16> to vector<8x32xbf16>
    %cst_100 = arith.constant dense<0.000000e+00> : vector<8x64xf32>
    %106 = tpu.matmul %105, %94, %cst_100 {dimension_numbers = #tpu.dot_dimension_numbers<[1], [0], [0], [1], [0, 0, 1, 1], [], []>} : vector<8x32xbf16>, vector<32x64xbf16>, vector<8x64xf32> -> vector<8x64xf32>
    %107 = arith.addf %92, %106 : vector<8x64xf32>
    %c2_101 = arith.constant 2 : index
    %c1_102 = arith.constant 1 : index
    %c0_103 = arith.constant 0 : index
    %c0_104 = arith.constant 0 : index
    %108 = vector.load %arg3[%c2_101, %c1_102, %c0_103, %c0_104] : memref<3x3x32x64xbf16, #tpu.memory_space<vmem>>, vector<1x1x32x64xbf16>
    %109 = vector.shape_cast %108 : vector<1x1x32x64xbf16> to vector<32x64xbf16>
    %c2_i32_105 = arith.constant 2 : i32
    %110 = arith.addi %0, %c2_i32_105 : i32
    %c0_106 = arith.constant 0 : index
    %111 = arith.index_cast %110 : i32 to index
    %c1_107 = arith.constant 1 : index
    %c0_108 = arith.constant 0 : index
    %112 = vector.load %arg2[%c0_106, %111, %c1_107, %c0_108] : memref<1x10x10x32xbf16, #tpu.memory_space<vmem>>, vector<1x1x8x32xbf16>
    %113 = vector.shape_cast %112 : vector<1x1x8x32xbf16> to vector<8x32xbf16>
    %cst_109 = arith.constant dense<0.000000e+00> : vector<8x64xf32>
    %114 = tpu.matmul %113, %109, %cst_109 {dimension_numbers = #tpu.dot_dimension_numbers<[1], [0], [0], [1], [0, 0, 1, 1], [], []>} : vector<8x32xbf16>, vector<32x64xbf16>, vector<8x64xf32> -> vector<8x64xf32>
    %115 = arith.addf %100, %114 : vector<8x64xf32>
    %c2_i32_110 = arith.constant 2 : i32
    %116 = arith.addi %0, %c2_i32_110 : i32
    %c1_i32_111 = arith.constant 1 : i32
    %117 = arith.addi %116, %c1_i32_111 : i32
    %c0_112 = arith.constant 0 : index
    %118 = arith.index_cast %117 : i32 to index
    %c1_113 = arith.constant 1 : index
    %c0_114 = arith.constant 0 : index
    %119 = vector.load %arg2[%c0_112, %118, %c1_113, %c0_114] : memref<1x10x10x32xbf16, #tpu.memory_space<vmem>>, vector<1x1x8x32xbf16>
    %120 = vector.shape_cast %119 : vector<1x1x8x32xbf16> to vector<8x32xbf16>
    %cst_115 = arith.constant dense<0.000000e+00> : vector<8x64xf32>
    %121 = tpu.matmul %120, %109, %cst_115 {dimension_numbers = #tpu.dot_dimension_numbers<[1], [0], [0], [1], [0, 0, 1, 1], [], []>} : vector<8x32xbf16>, vector<32x64xbf16>, vector<8x64xf32> -> vector<8x64xf32>
    %122 = arith.addf %107, %121 : vector<8x64xf32>
    %c2_116 = arith.constant 2 : index
    %c2_117 = arith.constant 2 : index
    %c0_118 = arith.constant 0 : index
    %c0_119 = arith.constant 0 : index
    %123 = vector.load %arg3[%c2_116, %c2_117, %c0_118, %c0_119] : memref<3x3x32x64xbf16, #tpu.memory_space<vmem>>, vector<1x1x32x64xbf16>
    %124 = vector.shape_cast %123 : vector<1x1x32x64xbf16> to vector<32x64xbf16>
    %c2_i32_120 = arith.constant 2 : i32
    %125 = arith.addi %0, %c2_i32_120 : i32
    %c0_121 = arith.constant 0 : index
    %126 = arith.index_cast %125 : i32 to index
    %c2_122 = arith.constant 2 : index
    %c0_123 = arith.constant 0 : index
    %127 = vector.load %arg2[%c0_121, %126, %c2_122, %c0_123] : memref<1x10x10x32xbf16, #tpu.memory_space<vmem>>, vector<1x1x8x32xbf16>
    %128 = vector.shape_cast %127 : vector<1x1x8x32xbf16> to vector<8x32xbf16>
    %cst_124 = arith.constant dense<0.000000e+00> : vector<8x64xf32>
    %129 = tpu.matmul %128, %124, %cst_124 {dimension_numbers = #tpu.dot_dimension_numbers<[1], [0], [0], [1], [0, 0, 1, 1], [], []>} : vector<8x32xbf16>, vector<32x64xbf16>, vector<8x64xf32> -> vector<8x64xf32>
    %130 = arith.addf %115, %129 : vector<8x64xf32>
    %c2_i32_125 = arith.constant 2 : i32
    %131 = arith.addi %0, %c2_i32_125 : i32
    %c1_i32_126 = arith.constant 1 : i32
    %132 = arith.addi %131, %c1_i32_126 : i32
    %c0_127 = arith.constant 0 : index
    %133 = arith.index_cast %132 : i32 to index
    %c2_128 = arith.constant 2 : index
    %c0_129 = arith.constant 0 : index
    %134 = vector.load %arg2[%c0_127, %133, %c2_128, %c0_129] : memref<1x10x10x32xbf16, #tpu.memory_space<vmem>>, vector<1x1x8x32xbf16>
    %135 = vector.shape_cast %134 : vector<1x1x8x32xbf16> to vector<8x32xbf16>
    %cst_130 = arith.constant dense<0.000000e+00> : vector<8x64xf32>
    %136 = tpu.matmul %135, %124, %cst_130 {dimension_numbers = #tpu.dot_dimension_numbers<[1], [0], [0], [1], [0, 0, 1, 1], [], []>} : vector<8x32xbf16>, vector<32x64xbf16>, vector<8x64xf32> -> vector<8x64xf32>
    %137 = arith.addf %122, %136 : vector<8x64xf32>
    %c0_131 = arith.constant 0 : index
    %c0_132 = arith.constant 0 : index
    %138 = vector.load %arg4[%c0_131, %c0_132] : memref<1x64xf32, #tpu.memory_space<vmem>>, vector<1x64xf32>
    %139 = vector.broadcast %138 : vector<1x64xf32> to vector<8x64xf32>
    %140 = arith.addf %130, %139 : vector<8x64xf32>
    %cst_133 = arith.constant 0.000000e+00 : f32
    %141 = vector.broadcast %cst_133 : f32 to vector<8x64xf32>
    %142 = arith.maximumf %140, %141 : vector<8x64xf32>
    %143 = vector.broadcast %138 : vector<1x64xf32> to vector<8x64xf32>
    %144 = arith.addf %137, %143 : vector<8x64xf32>
    %cst_134 = arith.constant 0.000000e+00 : f32
    %145 = vector.broadcast %cst_134 : f32 to vector<8x64xf32>
    %146 = arith.maximumf %144, %145 : vector<8x64xf32>
    %147 = arith.maximumf %142, %146 : vector<8x64xf32>
    %c0_135 = arith.constant 0 : index
    %c0_136 = arith.constant 0 : index
    %148 = vector.load %arg6[%c0_135, %c0_136] : memref<8x64xf32, #tpu.memory_space<vmem>>, vector<8x64xf32>
    tpu.vector_store %arg6[%c0_135, %c0_136], %147 {strides = array<i32>} : memref<8x64xf32, #tpu.memory_space<vmem>>, vector<8x64xf32>,
    %c0_137 = arith.constant 0 : index
    %c0_138 = arith.constant 0 : index
    %149 = tpu.strided_load %arg6[%c0_137, %c0_138] {strides = array<i32: 2, 1>} : memref<8x64xf32, #tpu.memory_space<vmem>>, vector<4x64xf32>
    %c1_139 = arith.constant 1 : index
    %c0_140 = arith.constant 0 : index
    %150 = tpu.strided_load %arg6[%c1_139, %c0_140] {strides = array<i32: 2, 1>} : memref<8x64xf32, #tpu.memory_space<vmem>>, vector<4x64xf32>
    %151 = arith.maximumf %149, %150 : vector<4x64xf32>
    %152 = arith.truncf %151 : vector<4x64xf32> to vector<4x64xbf16>
    %c0_141 = arith.constant 0 : index
    %c0_142 = arith.constant 0 : index
    %c0_143 = arith.constant 0 : index
    %c0_144 = arith.constant 0 : index
    %153 = vector.load %arg5[%c0_141, %c0_142, %c0_143, %c0_144] : memref<1x1x4x64xbf16, #tpu.memory_space<vmem>>, vector<1x1x4x64xbf16>
    %154 = vector.shape_cast %153 : vector<1x1x4x64xbf16> to vector<4x64xbf16>
    %155 = vector.shape_cast %152 : vector<4x64xbf16> to vector<1x1x4x64xbf16>
    tpu.vector_store %arg5[%c0_141, %c0_142, %c0_143, %c0_144], %155 {strides = array<i32>} : memref<1x1x4x64xbf16, #tpu.memory_space<vmem>>, vector<1x1x4x64xbf16>,
    return
  }
  func.func @transform_0(%arg0: i32, %arg1: i32) -> (i32, i32, i32, i32) {
    %c0_i32 = arith.constant 0 : i32
    %c0_i32_0 = arith.constant 0 : i32
    %c0_i32_1 = arith.constant 0 : i32
    %c0_i32_2 = arith.constant 0 : i32
    return %arg0, %c0_i32, %c0_i32_0, %c0_i32_1 : i32, i32, i32, i32
  }
  func.func @transform_1(%arg0: i32, %arg1: i32) -> (i32, i32, i32, i32) {
    %c0_i32 = arith.constant 0 : i32
    %c0_i32_0 = arith.constant 0 : i32
    %c0_i32_1 = arith.constant 0 : i32
    %c0_i32_2 = arith.constant 0 : i32
    %c0_i32_3 = arith.constant 0 : i32
    return %c0_i32, %c0_i32_0, %c0_i32_1, %c0_i32_2 : i32, i32, i32, i32
  }
  func.func @transform_2(%arg0: i32, %arg1: i32) -> (i32, i32) {
    %c0_i32 = arith.constant 0 : i32
    %c0_i32_0 = arith.constant 0 : i32
    %c0_i32_1 = arith.constant 0 : i32
    return %c0_i32, %c0_i32_0 : i32, i32
  }
  func.func @transform_3(%arg0: i32, %arg1: i32) -> (i32, i32, i32, i32) {
    %c0_i32 = arith.constant 0 : i32
    %c0_i32_0 = arith.constant 0 : i32
    %c0_i32_1 = arith.constant 0 : i32
    return %arg0, %arg1, %c0_i32, %c0_i32_0 : i32, i32, i32, i32
  }
}

module attributes {stable_mosaic.version = 11 : i64} {
  func.func @_mlp_head_kernel(%arg0: i32, %arg1: i32, %arg2: memref<8x512xbf16, #tpu.memory_space<vmem>>, %arg3: memref<512x512xbf16, #tpu.memory_space<vmem>>, %arg4: memref<1x512xf32, #tpu.memory_space<vmem>>, %arg5: memref<512x128xbf16, #tpu.memory_space<vmem>>, %arg6: memref<1x128xf32, #tpu.memory_space<vmem>>, %arg7: memref<8x128xf32, #tpu.memory_space<vmem>>, %arg8: memref<8x512xf32, #tpu.memory_space<vmem>>) attributes {dimension_semantics = [#tpu.dimension_semantics<parallel>, #tpu.dimension_semantics<arbitrary>], iteration_bounds = array<i64: 1, 2>, scalar_prefetch = 0 : i64, scratch_operands = 1 : i64, tpu.core_type = #tpu.core_type<tc>, window_params = [{transform_indices = @transform_0, window_bounds = array<i64: 8, 512>}, {transform_indices = @transform_1, window_bounds = array<i64: 512, 512>}, {pipeline_mode = #tpu.pipeline_mode<synchronous>, transform_indices = @transform_2, window_bounds = array<i64: 1, 512>}, {pipeline_mode = #tpu.pipeline_mode<synchronous>, transform_indices = @transform_3, window_bounds = array<i64: 512, 128>}, {pipeline_mode = #tpu.pipeline_mode<synchronous>, transform_indices = @transform_4, window_bounds = array<i64: 1, 128>}, {transform_indices = @transform_5, window_bounds = array<i64: 8, 128>}]} {
    %c0_i32 = arith.constant 0 : i32
    %0 = arith.cmpi eq, %arg1, %c0_i32 : i32
    %1 = arith.extui %0 : i1 to i32
    %c0_i32_0 = arith.constant 0 : i32
    %2 = arith.cmpi ne, %1, %c0_i32_0 : i32
    scf.if %2 {
      %cst_9 = arith.constant 0.000000e+00 : f32
      %12 = vector.broadcast %cst_9 : f32 to vector<8x512xf32>
      %c0_10 = arith.constant 0 : index
      %c0_11 = arith.constant 0 : index
      %13 = vector.load %arg8[%c0_10, %c0_11] : memref<8x512xf32, #tpu.memory_space<vmem>>, vector<8x512xf32>
      tpu.vector_store %arg8[%c0_10, %c0_11], %12 {strides = array<i32>} : memref<8x512xf32, #tpu.memory_space<vmem>>, vector<8x512xf32>,
    } else {
    }
    %c0 = arith.constant 0 : index
    %c0_1 = arith.constant 0 : index
    %3 = vector.load %arg8[%c0, %c0_1] : memref<8x512xf32, #tpu.memory_space<vmem>>, vector<8x512xf32>
    %c0_2 = arith.constant 0 : index
    %c0_3 = arith.constant 0 : index
    %4 = vector.load %arg2[%c0_2, %c0_3] : memref<8x512xbf16, #tpu.memory_space<vmem>>, vector<8x512xbf16>
    %c0_4 = arith.constant 0 : index
    %c0_5 = arith.constant 0 : index
    %5 = vector.load %arg3[%c0_4, %c0_5] : memref<512x512xbf16, #tpu.memory_space<vmem>>, vector<512x512xbf16>
    %cst = arith.constant dense<0.000000e+00> : vector<8x512xf32>
    %6 = tpu.matmul %4, %5, %cst {dimension_numbers = #tpu.dot_dimension_numbers<[1], [0], [0], [1], [0, 0, 1, 1], [], []>} : vector<8x512xbf16>, vector<512x512xbf16>, vector<8x512xf32> -> vector<8x512xf32>
    %7 = arith.addf %3, %6 : vector<8x512xf32>
    %c0_6 = arith.constant 0 : index
    %c0_7 = arith.constant 0 : index
    %8 = vector.load %arg8[%c0_6, %c0_7] : memref<8x512xf32, #tpu.memory_space<vmem>>, vector<8x512xf32>
    tpu.vector_store %arg8[%c0_6, %c0_7], %7 {strides = array<i32>} : memref<8x512xf32, #tpu.memory_space<vmem>>, vector<8x512xf32>,
    %c1_i32 = arith.constant 1 : i32
    %9 = arith.cmpi eq, %arg1, %c1_i32 : i32
    %10 = arith.extui %9 : i1 to i32
    %c0_i32_8 = arith.constant 0 : i32
    %11 = arith.cmpi ne, %10, %c0_i32_8 : i32
    scf.if %11 {
      %c0_9 = arith.constant 0 : index
      %c0_10 = arith.constant 0 : index
      %12 = vector.load %arg8[%c0_9, %c0_10] : memref<8x512xf32, #tpu.memory_space<vmem>>, vector<8x512xf32>
      %c0_11 = arith.constant 0 : index
      %c0_12 = arith.constant 0 : index
      %13 = vector.load %arg4[%c0_11, %c0_12] : memref<1x512xf32, #tpu.memory_space<vmem>>, vector<1x512xf32>
      %14 = vector.broadcast %13 : vector<1x512xf32> to vector<8x512xf32>
      %15 = arith.addf %12, %14 : vector<8x512xf32>
      %cst_13 = arith.constant 0.000000e+00 : f32
      %16 = vector.broadcast %cst_13 : f32 to vector<8x512xf32>
      %17 = arith.maximumf %15, %16 : vector<8x512xf32>
      %18 = arith.truncf %17 : vector<8x512xf32> to vector<8x512xbf16>
      %c0_14 = arith.constant 0 : index
      %c0_15 = arith.constant 0 : index
      %19 = vector.load %arg5[%c0_14, %c0_15] : memref<512x128xbf16, #tpu.memory_space<vmem>>, vector<512x128xbf16>
      %cst_16 = arith.constant dense<0.000000e+00> : vector<8x128xf32>
      %20 = tpu.matmul %18, %19, %cst_16 {dimension_numbers = #tpu.dot_dimension_numbers<[1], [0], [0], [1], [0, 0, 1, 1], [], []>} : vector<8x512xbf16>, vector<512x128xbf16>, vector<8x128xf32> -> vector<8x128xf32>
      %c0_17 = arith.constant 0 : index
      %c0_18 = arith.constant 0 : index
      %21 = vector.load %arg6[%c0_17, %c0_18] : memref<1x128xf32, #tpu.memory_space<vmem>>, vector<1x128xf32>
      %22 = vector.broadcast %21 : vector<1x128xf32> to vector<8x128xf32>
      %23 = arith.addf %20, %22 : vector<8x128xf32>
      %c0_19 = arith.constant 0 : index
      %c0_20 = arith.constant 0 : index
      %24 = vector.load %arg7[%c0_19, %c0_20] : memref<8x128xf32, #tpu.memory_space<vmem>>, vector<8x128xf32>
      tpu.vector_store %arg7[%c0_19, %c0_20], %23 {strides = array<i32>} : memref<8x128xf32, #tpu.memory_space<vmem>>, vector<8x128xf32>,
    } else {
    }
    return
  }
  func.func @transform_0(%arg0: i32, %arg1: i32) -> (i32, i32) {
    %c0_i32 = arith.constant 0 : i32
    return %arg0, %arg1 : i32, i32
  }
  func.func @transform_1(%arg0: i32, %arg1: i32) -> (i32, i32) {
    %c0_i32 = arith.constant 0 : i32
    %c0_i32_0 = arith.constant 0 : i32
    return %arg1, %c0_i32 : i32, i32
  }
  func.func @transform_2(%arg0: i32, %arg1: i32) -> (i32, i32) {
    %c0_i32 = arith.constant 0 : i32
    %c0_i32_0 = arith.constant 0 : i32
    %c0_i32_1 = arith.constant 0 : i32
    return %c0_i32, %c0_i32_0 : i32, i32
  }
  func.func @transform_3(%arg0: i32, %arg1: i32) -> (i32, i32) {
    %c0_i32 = arith.constant 0 : i32
    %c0_i32_0 = arith.constant 0 : i32
    %c0_i32_1 = arith.constant 0 : i32
    return %c0_i32, %c0_i32_0 : i32, i32
  }
  func.func @transform_4(%arg0: i32, %arg1: i32) -> (i32, i32) {
    %c0_i32 = arith.constant 0 : i32
    %c0_i32_0 = arith.constant 0 : i32
    %c0_i32_1 = arith.constant 0 : i32
    return %c0_i32, %c0_i32_0 : i32, i32
  }
  func.func @transform_5(%arg0: i32, %arg1: i32) -> (i32, i32) {
    %c0_i32 = arith.constant 0 : i32
    %c0_i32_0 = arith.constant 0 : i32
    return %arg0, %c0_i32 : i32, i32
  }
}

</mosaic_0001>

<bundles_post_ra>
// kernel: cnn_forward.3
= control target key start
LH: loop header
LB: loop body
LE: loop exit
PB: predicated region body
PF: predicated region fallthrough
CT: control target
= control target key end

     0   :  { %s1668_s12 = smov 0   ;;  %s1670_s13 = smov 0   ;;  %s1893_s0 = inlined_call_operand.vmem [shape: bf16[2,18,18,3], index: 0, kind: input, shape index: {}]   ;;  %s1894_s1 = inlined_call_operand.vmem [shape: bf16[3,3,3,32], index: 1, kind: input, shape index: {}]   ;;  %s1895_s2 = inlined_call_operand.vmem [shape: f32[1,32], index: 2, kind: input, shape index: {}]   ;;  %s1896_s3 = inlined_call_operand.vmem [shape: bf16[2,8,8,32], index: 3, kind: output, shape index: {}]  }
   0x1   :  { %s1672_s14 = smov 0   ;;  %s1674_s15 = smov 0  }
   0x2   :  { %s1676_s16 = smov 0  }
   0x3 LB: > { %s22_s17 = sadd.s32 1, %s1635_s14  ;;  %s25_s18 = sadd.s32 1, %s1639_s15  ;;  %s1643_s16 = sphi %s1676_s16, %s13_s16   ;;  %s1639_s15 = sphi %s1674_s15, %s1900_s15   ;;  %s1635_s14 = sphi %s1672_s14, %s1899_s14   ;;  %s1631_s13 = sphi %s1670_s13, %s1898_s13   ;;  %s1627_s12 = sphi %s1668_s12, %s1897_s12  }
   0x4   : > { %p23_p0 = scmp.ge.s32.totalorder %s22_s17, 8  ;;  %p1326_p1 = scmp.ge.s32.totalorder %s1643_s16, 1 }
   0x5   : > { %p151_p2 = scmp.lt.s32.totalorder %s1643_s16, 17 }
   0x6   : > { %s1902_s17 = smov (%p23_p0, %s22_s17), 0  ;;  %s1904_s18 = smov (!%p23_p0, %s25_s18), %s1639_s15 }
   0x7   : > { %p152_p3 = pnand %p1326_p1, %p151_p2  ;;  %p27_p4 = scmp.ge.s32.totalorder %s1904_s18, 2 }
   0x8   : > { %p178_p5 = scmp.lt.s32.totalorder (!%p152_p3), %s1631_s13, 1  ;;  %s1401_s23 = smul.u32 (!%p152_p3), 24, %s1627_s12 }
   0x9   : > { %s1906_s18 = smov (%p27_p4, %s1904_s18), 0  ;;  %155 = sbr.rel (%p152_p3) target bundleno = 312 (0x138), region = 32 }
   0xa   : > { %p185_p6 = scmp.lt.s32.totalorder (!%p152_p3), %s1627_s12, 7 }
   0xe   : > { %v193_v0 = vld [vmem:[%s1894_s1] sm:$0x3]  ;;  %vm233_vm0 = vcmask 1040384   ;;  %vm234_vm1 = vcmask 1041408   ;;  %v1645_v1 = vmov 0.0   ;;  %v1646_v2 = vmov 65535  }
   0xf   : > { %1444 = vmatprep.subr.bf16.mxu1 %v1645_v1  ;;  %v235_v3 = vsel %vm233_vm0, 4294967295, %v1646_v2  ;;  %1438 = vmatprep.subr.bf16.mxu0 %v1645_v1  ;;  %vm1647_vm2 = vmmov 0   ;;  %v1337_v5 = vld [vmem:[%s1894_s1 + $0x2] sm:$0x3]  ;;  %s1908_s13 = smov (!%p178_p5, %s1631_s13), 1  ;;  %vm229_vm3 = vcmask 23552  }
  0x10   : > { %v1708_v4 = vsel %vm234_vm1, %v235_v3, 0  ;;  %1446 = vmatprep.mubr.msk.bf16.mxu1 %vm1647_vm2, %v1645_v1  ;;  %1440 = vmatprep.mubr.msk.bf16.mxu0 %vm1647_vm2, %v1645_v1  ;;  %s1546_s24 = smul.u32 216, %s1908_s13  ;;  %v1350_v16 = vld [vmem:[%s1894_s1 + $0x4] sm:$0x3]  ;;  %vm216_vm4 = vsmask.f32 7424 }
  0x11   : > { %v284_v6 = vand.u32 %v1708_v4, %v193_v0  ;;  %v238_v7 = vand.u32 %v1337_v5, %v1708_v4  ;;  %v457_v28 = vand.u32 %v1350_v16, %v1708_v4  ;;  %vm449_vm5 = vcmask 1046528   ;;  %v1356_v37 = vld [vmem:[%s1894_s1 + $0x6] sm:$0x3]  ;;  %v1364_v49 = vld [vmem:[%s1894_s1 + $0x8] sm:$0x3]  ;;  %s1910_s12 = smov (!%p185_p6, %s1627_s12), 7 }
  0x12   : > { %s182_s27 = scalar_lea.vmem %s1893_s0, %s1546_s24  ;;  %v558_v43 = vand.u32 %v1356_v37, %v1708_v4  ;;  %v663_v52 = vand.u32 %v1364_v49, %v1708_v4  ;;  %v1372_v58 = vld [vmem:[%s1894_s1 + $0xa] sm:$0x3]  ;;  %v1377_v2 = vld [vmem:[%s1894_s1 + $0xc] sm:$0x3]  ;;  %vm1218_vm6 = vcmask 261120   ;;  %s1328_s25 = sshll.u32 %s1908_s13, 3 }
  0x13   : > { %1445 = vmatpush3.bf16.msra.mxu1 %v284_v6  ;;  %1439 = vmatpush3.bf16.msra.mxu0 %v238_v7  ;;  %s1729_s28 = scalar_lea.vmem %s182_s27, %s1401_s23  ;;  %v780_v61 = vand.u32 %v1372_v58, %v1708_v4  ;;  %s188_s26 = sadd.s32 %s1328_s25, %s1910_s12  ;;  %vm1226_vm7 = vcmask 257024  }
  0x14   : > { %1456 = vmatprep.subr.bf16.mxu1 %v1645_v1  ;;  %1450 = vmatprep.subr.bf16.mxu0 %v1645_v1  ;;  %v197_v8 = vld [vmem:[%s1729_s28] sm:$0xf]  ;;  %v198_v9 = vld [vmem:[%s1729_s28 + $0x4] sm:$0xf]  ;;  %v1342_v12 = vld [vmem:[%s1729_s28 + $0xc] sm:$0xf] }
  0x15   : > { %v1338_v10 = vcombine.low %v197_v8, %v198_v9  ;;  %v1734_v11 = vld [vmem:[%s1729_s28 + $0x8] ss:$0 sps:$4 sm:$0x11]   ;;  %v1343_v17 = vld [vmem:[%s1729_s28 + $0x10] sm:$0xf]  ;;  %v1789_v51 = vld [vmem:[%s1729_s28 + $0x18] sm:$0xff]  }
  0x16   : > { %v225_v15 = vshll.u32 %v1734_v11, 16  ;;  %v1345_v18 = vcombine.low %v1342_v12, %v1343_v17  ;;  %v1595_v19 = vld [vmem:[%s1729_s28 + $0x14] ss:$0 sps:$4 sm:$0x11]   ;;  %v1353_v22 = vld [vmem:[%s1729_s28 + $0xc] sm:$0xe] }
  0x17   : > { %1447 = vmatmul.mubr.msk.bf16.vlgmr.msra.gmra.mxu1 %vm229_vm3, %v1338_v10  ;;  %v218_v13 = vshrl.u32 %v1338_v10, 16  ;;  %v220_v14 = vshll.u32 %v1338_v10, 16  ;;  %v1749_v25 = vld [vmem:[%s1729_s28 + $0xc] sm:$0xff]   ;;  %v346_v27 = vshll.u32 %v1595_v19, 16  ;;  %v1354_v30 = vcombine.low %v1353_v22, %v1343_v17  ;;  %v445_v34 = vld [vmem:[%s1729_s28] sm:$0xe] }
  0x18   : > { %1457 = vmatpush3.bf16.msra.mxu1 %v284_v6  ;;  %1458 = vmatprep.mubr.msk.bf16.mxu1 %vm1647_vm2, %v1645_v1  ;;  %v227_v21 = vrot.slane %v225_v15, 1  ;;  %v341_v23 = vshll.u32 %v1345_v18, 16  ;;  %v339_v26 = vshrl.u32 %v1345_v18, 16  ;;  %v507_v36 = vrot.slane %v1595_v19, 1  ;;  %v1366_v38 = vld [vmem:[%s1729_s28 + $0x18] sm:$0xf] }
  0x19   : > { %v222_v20 = vrot.slane %v220_v14, 1  ;;  %1468 = vmatprep.subr.bf16.mxu1 %v1645_v1  ;;  %v348_v33 = vrot.slane %v346_v27, 1  ;;  %v506_v35 = vrot.slane %v1354_v30, 1  ;;  %v1367_v39 = vld [vmem:[%s1729_s28 + $0x1c] sm:$0xf]  ;;  %v1351_v40 = vcombine.low %v445_v34, %v198_v9  ;;  %v1601_v12 = vld [vmem:[%s1729_s28 + $0x24] sm:$0xff]  }
  0x1a   : > { %v343_v29 = vrot.slane %v341_v23, 1  ;;  %v1369_v44 = vcombine.low %v1366_v38, %v1367_v39  ;;  %v451_v46 = vrot.slane %v1734_v11, 1  ;;  %v1599_v47 = vld [vmem:[%s1729_s28 + $0x20] ss:$0 sps:$4 sm:$0x11]   ;;  %s1329_s27 = sshll.u32 %s188_s26, 2 }
  0x1b   : > { %v223_v24 = vor.u32 %v222_v20, %v218_v13  ;;  %v1770_v42 = vsel %vm449_vm5, %v506_v35, %v507_v36  ;;  %v450_v45 = vrot.slane %v1351_v40, 1  ;;  %v727_v55 = vshll.u32 %v1599_v47, 16  ;;  %v1374_v59 = vld [vmem:[%s1729_s28 + $0x18] sm:$0xe]  ;;  %v1387_v3 = vld [vmem:[%s1729_s28 + $0x24] sm:$0xf]  ;;  %s190_s30 = scalar_lea.vmem %s1896_s3, %s1329_s27 }
  0x1c   : > { %v344_v32 = vor.u32 %v343_v29, %v339_v26  ;;  %v722_v48 = vshll.u32 %v1369_v44, 16  ;;  %v720_v53 = vshrl.u32 %v1369_v44, 16  ;;  %v1375_v62 = vcombine.low %v1374_v59, %v1367_v39  ;;  %v1388_v5 = vld [vmem:[%s1729_s28 + $0x28] sm:$0xf]  ;;  %v1385_v11 = vld [vmem:[%s1894_s1 + $0xe] sm:$0x3] }
  0x1d   : > { %v228_v31 = vsel %vm216_vm4, %v223_v24, %v227_v21  ;;  %v452_v50 = vsel %vm449_vm5, %v450_v45, %v451_v46  ;;  %v729_v57 = vrot.slane %v727_v55, 1  ;;  %v830_v0 = vrot.slane %v1599_v47, 1  ;;  %v1603_v9 = vld [vmem:[%s1729_s28 + $0x2c] ss:$0 sps:$4 sm:$0x11]  }
  0x1e   : > { %1441 = vmatmul.mubr.msk.bf16.vlgmr.msra.gmra.mxu0 %vm229_vm3, %v228_v31  ;;  %v349_v41 = vsel %vm216_vm4, %v344_v32, %v348_v33  ;;  %v724_v54 = vrot.slane %v722_v48, 1  ;;  %v829_v63 = vrot.slane %v1375_v62, 1  ;;  %v1390_v8 = vcombine.low %v1387_v3, %v1388_v5  ;;  %v1393_v19 = vld [vmem:[%s1894_s1 + $0x10] sm:$0x3]  ;;  %v1395_v20 = vld [vmem:[%s1729_s28 + $0x24] sm:$0xe] }
  0x1f   : > { %1451 = vmatpush3.bf16.msra.mxu0 %v238_v7  ;;  %1459 = vmatmul.mubr.msk.bf16.vlgmr.msra.gmra.mxu1 %vm229_vm3, %v1749_v25  ;;  %v881_v7 = vand.u32 %v1377_v2, %v1708_v4  ;;  %v986_v13 = vand.u32 %v1385_v11, %v1708_v4  ;;  %v1050_v16 = vshll.u32 %v1603_v9, 16  ;;  %v1103_v22 = vand.u32 %v1393_v19, %v1708_v4 }
  0x20   : > { %1469 = vmatpush3.bf16.msra.mxu1 %v457_v28  ;;  %1452 = vmatprep.mubr.msk.bf16.mxu0 %vm1647_vm2, %v1645_v1  ;;  %v725_v56 = vor.u32 %v724_v54, %v720_v53  ;;  %v831_v6 = vsel %vm449_vm5, %v829_v63, %v830_v0  ;;  %v1045_v10 = vshll.u32 %v1390_v8, 16  ;;  %v1043_v14 = vshrl.u32 %v1390_v8, 16 }
  0x21   : > { %1462 = vmatprep.subr.bf16.mxu0 %v1645_v1  ;;  %1470 = vmatprep.mubr.msk.bf16.mxu1 %vm1647_vm2, %v1645_v1  ;;  %v1052_v18 = vrot.slane %v1050_v16, 1  ;;  %v1396_v23 = vcombine.low %v1395_v20, %v1388_v5 }
  0x22   : > { %1480 = vmatprep.subr.bf16.mxu1 %v1645_v1  ;;  %v730_v60 = vsel %vm216_vm4, %v725_v56, %v729_v57  ;;  %v1047_v15 = vrot.slane %v1045_v10, 1 }
  0x23   : > { %v1152_v24 = vrot.slane %v1396_v23, 1 }
  0x24   : > { %v1048_v17 = vor.u32 %v1047_v15, %v1043_v14 }
  0x26   : > { %1453 = vmatmul.mubr.msk.bf16.vlgmr.msra.gmra.mxu0 %vm229_vm3, %v349_v41  ;;  %v1053_v21 = vsel %vm216_vm4, %v1048_v17, %v1052_v18 }
  0x27   : > { %1463 = vmatpush3.bf16.msra.mxu0 %v457_v28  ;;  %1471 = vmatmul.mubr.msk.bf16.vlgmr.msra.gmra.mxu1 %vm229_vm3, %v1770_v42 }
  0x28   : > { %1481 = vmatpush3.bf16.msra.mxu1 %v558_v43  ;;  %1464 = vmatprep.mubr.msk.bf16.mxu0 %vm1647_vm2, %v1645_v1 }
  0x29   : > { %1474 = vmatprep.subr.bf16.mxu0 %v1645_v1  ;;  %1482 = vmatprep.mubr.msk.bf16.mxu1 %vm1647_vm2, %v1645_v1 }
  0x2a   : > { %1492 = vmatprep.subr.bf16.mxu1 %v1645_v1 }
  0x2e   : > { %1465 = vmatmul.mubr.msk.bf16.vlgmr.msra.gmra.mxu0 %vm229_vm3, %v452_v50 }
  0x2f   : > { %1475 = vmatpush3.bf16.msra.mxu0 %v558_v43  ;;  %1483 = vmatmul.mubr.msk.bf16.vlgmr.msra.gmra.mxu1 %vm229_vm3, %v1789_v51 }
  0x30   : > { %1493 = vmatpush3.bf16.msra.mxu1 %v663_v52  ;;  %1476 = vmatprep.mubr.msk.bf16.mxu0 %vm1647_vm2, %v1645_v1 }
  0x31   : > { %1486 = vmatprep.subr.bf16.mxu0 %v1645_v1  ;;  %1494 = vmatprep.mubr.msk.bf16.mxu1 %vm1647_vm2, %v1645_v1 }
  0x32   : > { %1504 = vmatprep.subr.bf16.mxu1 %v1645_v1 }
  0x36   : > { %1477 = vmatmul.mubr.msk.bf16.vlgmr.msra.gmra.mxu0 %vm229_vm3, %v1749_v25  ;;  %v1153_v25 = vrot.slane %v1603_v9, 1 }
  0x37   : > { %1487 = vmatpush3.bf16.msra.mxu0 %v663_v52  ;;  %1495 = vmatmul.mubr.msk.bf16.vlgmr.msra.gmra.mxu1 %vm229_vm3, %v730_v60 }
  0x38   : > { %1505 = vmatpush3.bf16.msra.mxu1 %v780_v61  ;;  %1488 = vmatprep.mubr.msk.bf16.mxu0 %vm1647_vm2, %v1645_v1  ;;  %v1154_v4 = vsel %vm449_vm5, %v1152_v24, %v1153_v25 }
  0x39   : > { %1498 = vmatprep.subr.bf16.mxu0 %v1645_v1  ;;  %1506 = vmatprep.mubr.msk.bf16.mxu1 %vm1647_vm2, %v1645_v1 }
  0x3a   : > { %1516 = vmatprep.subr.bf16.mxu1 %v1645_v1 }
  0x3e   : > { %1489 = vmatmul.mubr.msk.bf16.vlgmr.msra.gmra.mxu0 %vm229_vm3, %v349_v41 }
  0x3f   : > { %1499 = vmatpush3.bf16.msra.mxu0 %v780_v61  ;;  %1507 = vmatmul.mubr.msk.bf16.vlgmr.msra.gmra.mxu1 %vm229_vm3, %v831_v6 }
  0x40   : > { %1517 = vmatpush3.bf16.msra.mxu1 %v881_v7  ;;  %1500 = vmatprep.mubr.msk.bf16.mxu0 %vm1647_vm2, %v1645_v1 }
  0x41   : > { %1510 = vmatprep.subr.bf16.mxu0 %v1645_v1  ;;  %1518 = vmatprep.mubr.msk.bf16.mxu1 %vm1647_vm2, %v1645_v1 }
  0x42   : > { %1528 = vmatprep.subr.bf16.mxu1 %v1645_v1 }
  0x46   : > { %1501 = vmatmul.mubr.msk.bf16.vlgmr.msra.gmra.mxu0 %vm229_vm3, %v1770_v42 }
  0x47   : > { %1511 = vmatpush3.bf16.msra.mxu0 %v881_v7  ;;  %1519 = vmatmul.mubr.msk.bf16.vlgmr.msra.gmra.mxu1 %vm229_vm3, %v1601_v12 }
  0x48   : > { %1529 = vmatpush3.bf16.msra.mxu1 %v986_v13  ;;  %1512 = vmatprep.mubr.msk.bf16.mxu0 %vm1647_vm2, %v1645_v1 }
  0x49   : > { %1522 = vmatprep.subr.bf16.mxu0 %v1645_v1  ;;  %1530 = vmatprep.mubr.msk.bf16.mxu1 %vm1647_vm2, %v1645_v1 }
  0x4a   : > { %1540 = vmatprep.subr.bf16.mxu1 %v1645_v1 }
  0x4e   : > { %1513 = vmatmul.mubr.msk.bf16.vlgmr.msra.gmra.mxu0 %vm229_vm3, %v1789_v51 }
  0x4f   : > { %1523 = vmatpush3.bf16.msra.mxu0 %v986_v13  ;;  %1531 = vmatmul.mubr.msk.bf16.vlgmr.msra.gmra.mxu1 %vm229_vm3, %v1053_v21 }
  0x50   : > { %1541 = vmatpush3.bf16.msra.mxu1 %v1103_v22  ;;  %1524 = vmatprep.mubr.msk.bf16.mxu0 %vm1647_vm2, %v1645_v1 }
  0x51   : > { %1534 = vmatprep.subr.bf16.mxu0 %v1645_v1  ;;  %1542 = vmatprep.mubr.msk.bf16.mxu1 %vm1647_vm2, %v1645_v1 }
  0x56   : > { %1525 = vmatmul.mubr.msk.bf16.vlgmr.msra.gmra.mxu0 %vm229_vm3, %v730_v60 }
  0x57   : > { %1535 = vmatpush3.bf16.msra.mxu0 %v1103_v22  ;;  %1543 = vmatmul.mubr.msk.bf16.vlgmr.msra.gmra.mxu1 %vm229_vm3, %v1154_v4 }
  0x58   : > { %1536 = vmatprep.mubr.msk.bf16.mxu0 %vm1647_vm2, %v1645_v1 }
  0x5e   : > { %1537 = vmatmul.mubr.msk.bf16.vlgmr.msra.gmra.mxu0 %vm229_vm3, %v831_v6 }
  0xd7   : > { %v320_v26 = vpop.f32.mrf.mxu1 }
  0xd9   : > { %v1448_v27 = vpop.f32.mrf.mxu1 }
  0xdb   : > { %v1866_v28 = vpop.f32.mrf.mxu1 }
  0xdd   : > { %v1449_v29 = vpop.f32.mrf.mxu1 }
  0xde   : > { %v274_v30 = vpop.f32.mrf.mxu0 }
  0xdf   : > { %v436_v31 = vpop.f32.mrf.mxu1  ;;  %v321_v21 = vadd.f32 %v320_v26, %v274_v30 }
  0xe0   : > { %v1442_v32 = vpop.f32.mrf.mxu0 }
  0xe1   : > { %v1460_v33 = vpop.f32.mrf.mxu1 }
  0xe2   : > { %v277_v34 = vpop.f32.mrf.mxu0 }
  0xe3   : > { %v439_v35 = vpop.f32.mrf.mxu1  ;;  %v324_v33 = vadd.f32 %v1866_v28, %v277_v34 }
  0xe4   : > { %v1443_v36 = vpop.f32.mrf.mxu0 }
  0xe5   : > { %v1461_v37 = vpop.f32.mrf.mxu1 }
  0xe6   : > { %v387_v38 = vpop.f32.mrf.mxu0 }
  0xe7   : > { %v546_v39 = vpop.f32.mrf.mxu1  ;;  %v437_v12 = vadd.f32 %v436_v31, %v387_v38 }
  0xe8   : > { %v1454_v40 = vpop.f32.mrf.mxu0 }
  0xe9   : > { %v1472_v41 = vpop.f32.mrf.mxu1  ;;  %v553_v17 = vadd.f32 %v546_v39, %v437_v12 }
  0xea   : > { %v390_v1 = vpop.f32.mrf.mxu0 }
  0xeb   : > { %v549_v42 = vpop.f32.mrf.mxu1  ;;  %v440_v18 = vadd.f32 %v439_v35, %v390_v1 }
  0xec   : > { %v1455_v43 = vpop.f32.mrf.mxu0 }
  0xed   : > { %v1473_v44 = vpop.f32.mrf.mxu1  ;;  %v554_v25 = vadd.f32 %v549_v42, %v440_v18 }
  0xee   : > { %v493_v45 = vpop.f32.mrf.mxu0 }
  0xef   : > { %v651_v46 = vpop.f32.mrf.mxu1  ;;  %v500_v4 = vadd.f32 %v493_v45, %v321_v21 }
  0xf0   : > { %v1466_v47 = vpop.f32.mrf.mxu0  ;;  %v658_v22 = vadd.f32 %v651_v46, %v553_v17 }
  0xf1   : > { %v1484_v48 = vpop.f32.mrf.mxu1 }
  0xf2   : > { %v496_v49 = vpop.f32.mrf.mxu0 }
  0xf3   : > { %v654_v50 = vpop.f32.mrf.mxu1  ;;  %v501_v39 = vadd.f32 %v496_v49, %v324_v33  ;;  %v1398_v49 = vld [vmem:[%s1895_s2] ss:$0 sm:$0xff] }
  0xf4   : > { %v1467_v51 = vpop.f32.mrf.mxu0  ;;  %v659_v31 = vadd.f32 %v654_v50, %v554_v25 }
  0xf5   : > { %v1485_v52 = vpop.f32.mrf.mxu1 }
  0xf6   : > { %v594_v53 = vpop.f32.mrf.mxu0 }
  0xf7   : > { %v768_v54 = vpop.f32.mrf.mxu1  ;;  %v601_v36 = vadd.f32 %v594_v53, %v500_v4 }
  0xf8   : > { %v1478_v55 = vpop.f32.mrf.mxu0  ;;  %v775_v27 = vadd.f32 %v768_v54, %v658_v22 }
  0xf9   : > { %v1496_v56 = vpop.f32.mrf.mxu1 }
  0xfa   : > { %v597_v57 = vpop.f32.mrf.mxu0 }
  0xfb   : > { %v771_v58 = vpop.f32.mrf.mxu1  ;;  %v602_v43 = vadd.f32 %v597_v57, %v501_v39 }
  0xfc   : > { %v1479_v59 = vpop.f32.mrf.mxu0  ;;  %v776_v35 = vadd.f32 %v771_v58, %v659_v31 }
  0xfd   : > { %v1497_v60 = vpop.f32.mrf.mxu1 }
  0xfe   : > { %v699_v61 = vpop.f32.mrf.mxu0 }
  0xff   : > { %v869_v62 = vpop.f32.mrf.mxu1  ;;  %v706_v41 = vadd.f32 %v699_v61, %v601_v36 }
 0x100   : > { %v1490_v63 = vpop.f32.mrf.mxu0  ;;  %v876_v37 = vadd.f32 %v869_v62, %v775_v27 }
 0x101   : > { %v1508_v0 = vpop.f32.mrf.mxu1 }
 0x102   : > { %v702_v2 = vpop.f32.mrf.mxu0 }
 0x103   : > { %v872_v3 = vpop.f32.mrf.mxu1  ;;  %v707_v48 = vadd.f32 %v702_v2, %v602_v43 }
 0x104   : > { %v1491_v5 = vpop.f32.mrf.mxu0  ;;  %v877_v44 = vadd.f32 %v872_v3, %v776_v35 }
 0x105   : > { %v1509_v6 = vpop.f32.mrf.mxu1 }
 0x106   : > { %v816_v7 = vpop.f32.mrf.mxu0 }
 0x107   : > { %v974_v8 = vpop.f32.mrf.mxu1  ;;  %v823_v42 = vadd.f32 %v816_v7, %v706_v41 }
 0x108   : > { %v1502_v9 = vpop.f32.mrf.mxu0  ;;  %v981_v1 = vadd.f32 %v974_v8, %v876_v37 }
 0x109   : > { %v1520_v10 = vpop.f32.mrf.mxu1 }
 0x10a   : > { %v819_v11 = vpop.f32.mrf.mxu0 }
 0x10b   : > { %v977_v13 = vpop.f32.mrf.mxu1  ;;  %v824_v53 = vadd.f32 %v819_v11, %v707_v48 }
 0x10c   : > { %v1503_v14 = vpop.f32.mrf.mxu0  ;;  %v982_v51 = vadd.f32 %v977_v13, %v877_v44 }
 0x10d   : > { %v1521_v15 = vpop.f32.mrf.mxu1 }
 0x10e   : > { %v917_v16 = vpop.f32.mrf.mxu0 }
 0x10f   : > { %v1091_v19 = vpop.f32.mrf.mxu1  ;;  %v924_v28 = vadd.f32 %v917_v16, %v823_v42 }
 0x110   : > { %v1514_v20 = vpop.f32.mrf.mxu0  ;;  %v1098_v45 = vadd.f32 %v1091_v19, %v981_v1 }
 0x111   : > { %v1532_v23 = vpop.f32.mrf.mxu1 }
 0x112   : > { %v920_v24 = vpop.f32.mrf.mxu0 }
 0x113   : > { %v1094_v29 = vpop.f32.mrf.mxu1  ;;  %v925_v58 = vadd.f32 %v920_v24, %v824_v53 }
 0x114   : > { %v1515_v32 = vpop.f32.mrf.mxu0  ;;  %v1099_v54 = vadd.f32 %v1094_v29, %v982_v51 }
 0x115   : > { %v1533_v38 = vpop.f32.mrf.mxu1 }
 0x116   : > { %v1022_v40 = vpop.f32.mrf.mxu0 }
 0x117   : > { %v1192_v26 = vpop.f32.mrf.mxu1  ;;  %v1029_v55 = vadd.f32 %v1022_v40, %v924_v28 }
 0x118   : > { %v1526_v30 = vpop.f32.mrf.mxu0  ;;  %v1199_v34 = vadd.f32 %v1192_v26, %v1098_v45 }
 0x119   : > { %v1544_v46 = vpop.f32.mrf.mxu1 }
 0x11a   : > { %v1025_v47 = vpop.f32.mrf.mxu0  ;;  %v1212_v59 = vadd.f32 %v1398_v49, %v1199_v34 }
 0x11b   : > { %v1195_v50 = vpop.f32.mrf.mxu1  ;;  %v1030_v63 = vadd.f32 %v1025_v47, %v925_v58 }
 0x11c   : > { %v1527_v52 = vpop.f32.mrf.mxu0  ;;  %v1200_v60 = vadd.f32 %v1195_v50, %v1099_v54  ;;  %v1214_v3 = vmax.f32 %v1212_v59, 0.0 }
 0x11d   : > { %v1545_v56 = vpop.f32.mrf.mxu1 }
 0x11e   : > { %v1139_v57 = vpop.f32.mrf.mxu0  ;;  %v1213_v5 = vadd.f32 %v1398_v49, %v1200_v60 }
 0x11f   : > { %v1146_v61 = vadd.f32 %v1139_v57, %v1029_v55 }
 0x120   : > { %v1538_v62 = vpop.f32.mrf.mxu0  ;;  %v1215_v11 = vmax.f32 %v1213_v5, 0.0 }
 0x121   : > { %v1208_v0 = vadd.f32 %v1398_v49, %v1146_v61 }
 0x122   : > { %v1142_v2 = vpop.f32.mrf.mxu0 }
 0x123   : > { %v1210_v6 = vmax.f32 %v1208_v0, 0.0  ;;  %v1147_v7 = vadd.f32 %v1142_v2, %v1030_v63 }
 0x124   : > { %v1539_v8 = vpop.f32.mrf.mxu0 }
 0x125   : > { %v1216_v9 = vmax.f32 %v1210_v6, %v1214_v3  ;;  %v1209_v10 = vadd.f32 %v1398_v49, %v1147_v7 }
 0x127   : > { %1219 = vst.msk [vmem:[#allocation2] sm:$0xff] %vm1218_vm6, %v1216_v9  ;;  %v1211_v12 = vmax.f32 %v1209_v10, 0.0 }
 0x129   : > { %v1217_v13 = vmax.f32 %v1211_v12, %v1215_v11 }
 0x12b   : > { %1220 = vst.msk [vmem:[#allocation2 + $0x8] sm:$0xff] %vm1218_vm6, %v1217_v13 }
 0x132   : > { %v1221_v14 = vld [vmem:[#allocation2] ss:$2 sm:$0xff]  ;;  %v1223_v15 = vld [vmem:[#allocation2 + $0x1] ss:$2 sm:$0xff] }
 0x133   : > { %v1224_v16 = vmax.f32 %v1221_v14, %v1223_v15 }
 0x135   : > { %v1225_v17 = vpack.c.bf16 %v1224_v16, %v1224_v16 }
 0x137   : > { %1227 = vst.msk [vmem:[%s190_s30] sm:$0xf] %vm1226_vm7, %v1225_v17 }
 0x138 PF: > { %s13_s16 = sadd.s32 1, %s1643_s16   ;;  %s1897_s12 = smov %s1635_s14 }
 0x139   : > { %p10_p7 = scmp.ge.s32.totalorder %s13_s16, 18   ;;  %s1898_s13 = smov %s1639_s15 }
 0x13a   : > { %s1899_s14 = smov %s1902_s17  ;;  %s1900_s15 = smov %s1906_s18 }
 0x13b   :  { %12 = sbr.rel (!%p10_p7) target bundleno = 3 (0x3), region = 75 }

// kernel: cnn_forward.4
= control target key start
LH: loop header
LB: loop body
LE: loop exit
PB: predicated region body
PF: predicated region fallthrough
CT: control target
= control target key end

     0   :  { %s1767_s12 = smov 0   ;;  %s1769_s13 = smov 0   ;;  %s2015_s0 = inlined_call_operand.vmem [shape: bf16[2,10,10,32], index: 0, kind: input, shape index: {}]   ;;  %s2016_s1 = inlined_call_operand.vmem [shape: bf16[3,3,32,64], index: 1, kind: input, shape index: {}]   ;;  %s2017_s2 = inlined_call_operand.vmem [shape: f32[1,64], index: 2, kind: input, shape index: {}]   ;;  %s2018_s3 = inlined_call_operand.vmem [shape: bf16[2,4,4,64], index: 3, kind: output, shape index: {}]  }
   0x1   :  { %s1771_s14 = smov 0   ;;  %s1773_s15 = smov 0  }
   0x2   :  { %s1775_s16 = smov 0  }
   0x3 LB: > { %s22_s17 = sadd.s32 1, %s1735_s14  ;;  %s25_s18 = sadd.s32 1, %s1739_s15  ;;  %s1743_s16 = sphi %s1775_s16, %s13_s16   ;;  %s1739_s15 = sphi %s1773_s15, %s2022_s15   ;;  %s1735_s14 = sphi %s1771_s14, %s2021_s14   ;;  %s1731_s13 = sphi %s1769_s13, %s2020_s13   ;;  %s1727_s12 = sphi %s1767_s12, %s2019_s12  }
   0x4   : > { %p23_p0 = scmp.ge.s32.totalorder %s22_s17, 4  ;;  %p1329_p1 = scmp.ge.s32.totalorder %s1743_s16, 1 }
   0x5   : > { %p151_p2 = scmp.lt.s32.totalorder %s1743_s16, 9 }
   0x6   : > { %s2024_s17 = smov (%p23_p0, %s22_s17), 0  ;;  %s2026_s18 = smov (!%p23_p0, %s25_s18), %s1739_s15 }
   0x7   : > { %p152_p3 = pnand %p1329_p1, %p151_p2  ;;  %p27_p4 = scmp.ge.s32.totalorder %s2026_s18, 2 }
   0x8   : > { %p178_p5 = scmp.lt.s32.totalorder (!%p152_p3), %s1731_s13, 1  ;;  %s1434_s28 = sshll.u32 (!%p152_p3), %s1727_s12, 4 }
   0x9   : > { %s2028_s18 = smov (%p27_p4, %s2026_s18), 0  ;;  %155 = sbr.rel (%p152_p3) target bundleno = 306 (0x132), region = 32 }
   0xa   : > { %p185_p6 = scmp.lt.s32.totalorder (!%p152_p3), %s1727_s12, 3 }
   0xe   : > { %v1679_v0 = vld [vmem:[%s2016_s1 + $0x8] sm:$0xff]   ;;  %v1745_v1 = vmov 0.0   ;;  %v1680_v2 = vld [vmem:[%s2016_s1] sm:$0xff]   ;;  %v1681_v3 = vld [vmem:[%s2016_s1 + $0x18] sm:$0xff]   ;;  %vm1746_vm0 = vmmov 0   ;;  %s2030_s13 = smov (!%p178_p5, %s1731_s13), 1 }
   0xf   : > { %1500 = vmatprep.subr.bf16.mxu1 %v1745_v1  ;;  %1492 = vmatprep.subr.bf16.mxu0 %v1745_v1  ;;  %v1684_v4 = vld [vmem:[%s2016_s1 + $0x10] sm:$0xff]   ;;  %s1636_s27 = smul.u32 80, %s2030_s13  ;;  %vm236_vm1 = vcmask 261120   ;;  %v1685_v13 = vld [vmem:[%s2016_s1 + $0x28] sm:$0xff]   ;;  %v1686_v19 = vld [vmem:[%s2016_s1 + $0x20] sm:$0xff]   ;;  %vm1222_vm2 = vcmask 523264  }
  0x10   : > { %1501 = vmatpush3.bf16.msra.mxu1 %v1679_v0  ;;  %1504 = vmatprep.mubr.msk.bf16.mxu1 %vm1746_vm0, %v1745_v1  ;;  %v1689_v25 = vld [vmem:[%s2016_s1 + $0x38] sm:$0xff]   ;;  %v1690_v31 = vld [vmem:[%s2016_s1 + $0x30] sm:$0xff]   ;;  %v1691_v35 = vld [vmem:[%s2016_s1 + $0x48] sm:$0xff]   ;;  %s2032_s12 = smov (!%p185_p6, %s1727_s12), 3  ;;  %s1331_s23 = sshll.u32 %s2030_s13, 2  ;;  %vm1229_vm3 = vcmask 517120  }
  0x11   : > { %1502 = vmatprep.subr.bf16.mxu1 %v1745_v1  ;;  %1496 = vmatprep.mubr.msk.bf16.mxu0 %vm1746_vm0, %v1745_v1  ;;  %s182_s4 = scalar_lea.vmem %s2015_s0, %s1636_s27  ;;  %v1692_v38 = vld [vmem:[%s2016_s1 + $0x40] sm:$0xff]   ;;  %v1694_v40 = vld [vmem:[%s2016_s1 + $0x58] sm:$0xff]   ;;  %v1695_v43 = vld [vmem:[%s2016_s1 + $0x50] sm:$0xff]   ;;  %s188_s24 = sadd.s32 %s1331_s23, %s2032_s12 }
  0x12   : > { %1493 = vmatpush3.bf16.msra.mxu0 %v1681_v3  ;;  %s1827_s5 = scalar_lea.vmem %s182_s4, %s1434_s28  ;;  %v1697_v45 = vld [vmem:[%s2016_s1 + $0x68] sm:$0xff]   ;;  %v1698_v49 = vld [vmem:[%s2016_s1 + $0x60] sm:$0xff]   ;;  %v1699_v52 = vld [vmem:[%s2016_s1 + $0x78] sm:$0xff]   ;;  %s1332_s25 = sshll.u32 %s188_s24, 1 }
  0x13   : > { %1494 = vmatprep.subr.bf16.mxu0 %v1745_v1  ;;  %v200_v5 = vld [vmem:[%s1827_s5] sm:$0xf]  ;;  %v211_v6 = vld [vmem:[%s1827_s5 + $0x4] sm:$0x1]  ;;  %v1350_v8 = vld [vmem:[%s1827_s5 + $0x8] sm:$0xf]  ;;  %s190_s28 = scalar_lea.vmem %s2018_s3, %s1332_s25 }
  0x14   : > { %1503 = vmatpush3.bf16.msra.mxu1 %v1680_v2  ;;  %v1343_v7 = vcombine.low %v200_v5, %v211_v6  ;;  %v1351_v9 = vld [vmem:[%s1827_s5 + $0xc] sm:$0x1]  ;;  %v1842_v16 = vld [vmem:[%s1827_s5 + $0x8] sm:$0xf]  ;;  %v440_v26 = vld [vmem:[%s1827_s5] sm:$0xe] }
  0x15   : > { %1516 = vmatprep.subr.bf16.mxu1 %v1745_v1  ;;  %v1352_v10 = vcombine.low %v1350_v8, %v1351_v9  ;;  %v1363_v17 = vld [vmem:[%s1827_s5 + $0x8] sm:$0xe]  ;;  %v1384_v27 = vld [vmem:[%s1827_s5 + $0x10] sm:$0xf]  ;;  %v1385_v28 = vld [vmem:[%s1827_s5 + $0x14] sm:$0x1]  ;;  %v1359_v29 = vcombine.low %v440_v26, %v211_v6 }
  0x16   : > { %1495 = vmatpush3.bf16.msra.mxu0 %v1684_v4  ;;  %v218_v11 = vshrl.u32 %v1343_v7, 16  ;;  %v220_v12 = vshll.u32 %v1343_v7, 16  ;;  %v1364_v22 = vcombine.low %v1363_v17, %v1351_v9  ;;  %v1386_v30 = vcombine.low %v1384_v27, %v1385_v28  ;;  %v1884_v34 = vld [vmem:[%s1827_s5 + $0x10] sm:$0xf]  ;;  %v1416_v46 = vld [vmem:[%s1827_s5 + $0x18] sm:$0xf] }
  0x17   : > { %1508 = vmatprep.subr.bf16.mxu0 %v1745_v1  ;;  %1505 = vmatmul.mubr.msk.bf16.vlgmr.msra.gmra.mxu1 %vm236_vm1, %v200_v5  ;;  %v345_v15 = vshll.u32 %v1352_v10, 16  ;;  %v343_v20 = vshrl.u32 %v1352_v10, 16  ;;  %v444_v32 = vrot.slane %v1359_v29, 1  ;;  %v1395_v41 = vld [vmem:[%s1827_s5 + $0x10] sm:$0xe]  ;;  %v1702_v57 = vld [vmem:[%s2016_s1 + $0x88] sm:$0xff]  }
  0x18   : > { %1517 = vmatpush3.bf16.msra.mxu1 %v1679_v0  ;;  %1520 = vmatprep.mubr.msk.bf16.mxu1 %vm1746_vm0, %v1745_v1  ;;  %v222_v14 = vrot.slane %v220_v12, 1  ;;  %v1860_v24 = vrot.slane %v1364_v22, 1  ;;  %v725_v33 = vshll.u32 %v1386_v30, 16  ;;  %v723_v36 = vshrl.u32 %v1386_v30, 16  ;;  %v1417_v47 = vld [vmem:[%s1827_s5 + $0x1c] sm:$0x1] }
  0x19   : > { %1518 = vmatprep.subr.bf16.mxu1 %v1745_v1  ;;  %v347_v21 = vrot.slane %v345_v15, 1  ;;  %v1396_v42 = vcombine.low %v1395_v41, %v1385_v28  ;;  %v1418_v48 = vcombine.low %v1416_v46, %v1417_v47  ;;  %v1407_v51 = vld [vmem:[%s1827_s5 + $0x18] sm:$0xf]  ;;  %v1700_v55 = vld [vmem:[%s2016_s1 + $0x70] sm:$0xff]   ;;  %v1703_v60 = vld [vmem:[%s2016_s1 + $0x80] sm:$0xff]  }
  0x1a   : > { %v223_v18 = vor.u32 %v222_v14, %v218_v11  ;;  %v727_v37 = vrot.slane %v725_v33, 1  ;;  %v1427_v58 = vld [vmem:[%s1827_s5 + $0x18] sm:$0xe] }
  0x1b   : > { %v1858_v23 = vor.u32 %v347_v21, %v343_v20  ;;  %v1924_v44 = vrot.slane %v1396_v42, 1  ;;  %v1055_v50 = vshll.u32 %v1418_v48, 16  ;;  %v1053_v53 = vshrl.u32 %v1418_v48, 16 }
  0x1c   : > { %1519 = vmatpush3.bf16.msra.mxu1 %v1680_v2  ;;  %1497 = vmatmul.mubr.msk.bf16.vlgmr.msra.gmra.mxu0 %vm236_vm1, %v223_v18  ;;  %v1903_v39 = vor.u32 %v727_v37, %v723_v36  ;;  %v1428_v59 = vcombine.low %v1427_v58, %v1417_v47 }
  0x1d   : > { %1532 = vmatprep.subr.bf16.mxu1 %v1745_v1  ;;  %1509 = vmatpush3.bf16.msra.mxu0 %v1681_v3  ;;  %v1057_v54 = vrot.slane %v1055_v50, 1 }
  0x1e   : > { %1510 = vmatprep.subr.bf16.mxu0 %v1745_v1  ;;  %1512 = vmatprep.mubr.msk.bf16.mxu0 %vm1746_vm0, %v1745_v1  ;;  %v1165_v61 = vrot.slane %v1428_v59, 1 }
  0x1f   : > { %1521 = vmatmul.mubr.msk.bf16.vlgmr.msra.gmra.mxu1 %vm236_vm1, %v1842_v16  ;;  %v1058_v56 = vor.u32 %v1057_v54, %v1053_v53 }
  0x20   : > { %1533 = vmatpush3.bf16.msra.mxu1 %v1685_v13  ;;  %1536 = vmatprep.mubr.msk.bf16.mxu1 %vm1746_vm0, %v1745_v1 }
  0x21   : > { %1534 = vmatprep.subr.bf16.mxu1 %v1745_v1  ;;  %1511 = vmatpush3.bf16.msra.mxu0 %v1684_v4 }
  0x22   : > { %1524 = vmatprep.subr.bf16.mxu0 %v1745_v1 }
  0x24   : > { %1535 = vmatpush3.bf16.msra.mxu1 %v1686_v19  ;;  %1513 = vmatmul.mubr.msk.bf16.vlgmr.msra.gmra.mxu0 %vm236_vm1, %v1858_v23 }
  0x25   : > { %1548 = vmatprep.subr.bf16.mxu1 %v1745_v1  ;;  %1525 = vmatpush3.bf16.msra.mxu0 %v1685_v13 }
  0x26   : > { %1526 = vmatprep.subr.bf16.mxu0 %v1745_v1  ;;  %1528 = vmatprep.mubr.msk.bf16.mxu0 %vm1746_vm0, %v1745_v1 }
  0x27   : > { %1537 = vmatmul.mubr.msk.bf16.vlgmr.msra.gmra.mxu1 %vm236_vm1, %v1860_v24 }
  0x28   : > { %1549 = vmatpush3.bf16.msra.mxu1 %v1689_v25  ;;  %1552 = vmatprep.mubr.msk.bf16.mxu1 %vm1746_vm0, %v1745_v1 }
  0x29   : > { %1550 = vmatprep.subr.bf16.mxu1 %v1745_v1  ;;  %1527 = vmatpush3.bf16.msra.mxu0 %v1686_v19 }
  0x2a   : > { %1540 = vmatprep.subr.bf16.mxu0 %v1745_v1 }
  0x2c   : > { %1551 = vmatpush3.bf16.msra.mxu1 %v1690_v31  ;;  %1529 = vmatmul.mubr.msk.bf16.vlgmr.msra.gmra.mxu0 %vm236_vm1, %v444_v32 }
  0x2d   : > { %1564 = vmatprep.subr.bf16.mxu1 %v1745_v1  ;;  %1541 = vmatpush3.bf16.msra.mxu0 %v1689_v25 }
  0x2e   : > { %1542 = vmatprep.subr.bf16.mxu0 %v1745_v1  ;;  %1544 = vmatprep.mubr.msk.bf16.mxu0 %vm1746_vm0, %v1745_v1 }
  0x2f   : > { %1553 = vmatmul.mubr.msk.bf16.vlgmr.msra.gmra.mxu1 %vm236_vm1, %v1884_v34 }
  0x30   : > { %1565 = vmatpush3.bf16.msra.mxu1 %v1691_v35  ;;  %1568 = vmatprep.mubr.msk.bf16.mxu1 %vm1746_vm0, %v1745_v1 }
  0x31   : > { %1566 = vmatprep.subr.bf16.mxu1 %v1745_v1  ;;  %1543 = vmatpush3.bf16.msra.mxu0 %v1690_v31 }
  0x32   : > { %1556 = vmatprep.subr.bf16.mxu0 %v1745_v1 }
  0x34   : > { %1567 = vmatpush3.bf16.msra.mxu1 %v1692_v38  ;;  %1545 = vmatmul.mubr.msk.bf16.vlgmr.msra.gmra.mxu0 %vm236_vm1, %v1842_v16 }
  0x35   : > { %1580 = vmatprep.subr.bf16.mxu1 %v1745_v1  ;;  %1557 = vmatpush3.bf16.msra.mxu0 %v1691_v35 }
  0x36   : > { %1558 = vmatprep.subr.bf16.mxu0 %v1745_v1  ;;  %1560 = vmatprep.mubr.msk.bf16.mxu0 %vm1746_vm0, %v1745_v1 }
  0x37   : > { %1569 = vmatmul.mubr.msk.bf16.vlgmr.msra.gmra.mxu1 %vm236_vm1, %v1903_v39 }
  0x38   : > { %1581 = vmatpush3.bf16.msra.mxu1 %v1694_v40  ;;  %1584 = vmatprep.mubr.msk.bf16.mxu1 %vm1746_vm0, %v1745_v1 }
  0x39   : > { %1582 = vmatprep.subr.bf16.mxu1 %v1745_v1  ;;  %1559 = vmatpush3.bf16.msra.mxu0 %v1692_v38 }
  0x3a   : > { %1572 = vmatprep.subr.bf16.mxu0 %v1745_v1 }
  0x3c   : > { %1583 = vmatpush3.bf16.msra.mxu1 %v1695_v43  ;;  %1561 = vmatmul.mubr.msk.bf16.vlgmr.msra.gmra.mxu0 %vm236_vm1, %v1858_v23 }
  0x3d   : > { %1596 = vmatprep.subr.bf16.mxu1 %v1745_v1  ;;  %1573 = vmatpush3.bf16.msra.mxu0 %v1694_v40 }
  0x3e   : > { %1574 = vmatprep.subr.bf16.mxu0 %v1745_v1  ;;  %1576 = vmatprep.mubr.msk.bf16.mxu0 %vm1746_vm0, %v1745_v1 }
  0x3f   : > { %1585 = vmatmul.mubr.msk.bf16.vlgmr.msra.gmra.mxu1 %vm236_vm1, %v1924_v44 }
  0x40   : > { %1597 = vmatpush3.bf16.msra.mxu1 %v1697_v45  ;;  %1600 = vmatprep.mubr.msk.bf16.mxu1 %vm1746_vm0, %v1745_v1 }
  0x41   : > { %1598 = vmatprep.subr.bf16.mxu1 %v1745_v1  ;;  %1575 = vmatpush3.bf16.msra.mxu0 %v1695_v43 }
  0x42   : > { %1588 = vmatprep.subr.bf16.mxu0 %v1745_v1 }
  0x44   : > { %1599 = vmatpush3.bf16.msra.mxu1 %v1698_v49  ;;  %1577 = vmatmul.mubr.msk.bf16.vlgmr.msra.gmra.mxu0 %vm236_vm1, %v1860_v24 }
  0x45   : > { %1612 = vmatprep.subr.bf16.mxu1 %v1745_v1  ;;  %1589 = vmatpush3.bf16.msra.mxu0 %v1697_v45 }
  0x46   : > { %1590 = vmatprep.subr.bf16.mxu0 %v1745_v1  ;;  %1592 = vmatprep.mubr.msk.bf16.mxu0 %vm1746_vm0, %v1745_v1 }
  0x47   : > { %1601 = vmatmul.mubr.msk.bf16.vlgmr.msra.gmra.mxu1 %vm236_vm1, %v1407_v51 }
  0x48   : > { %1613 = vmatpush3.bf16.msra.mxu1 %v1699_v52  ;;  %1616 = vmatprep.mubr.msk.bf16.mxu1 %vm1746_vm0, %v1745_v1 }
  0x49   : > { %1614 = vmatprep.subr.bf16.mxu1 %v1745_v1  ;;  %1591 = vmatpush3.bf16.msra.mxu0 %v1698_v49 }
  0x4a   : > { %1604 = vmatprep.subr.bf16.mxu0 %v1745_v1 }
  0x4c   : > { %1615 = vmatpush3.bf16.msra.mxu1 %v1700_v55  ;;  %1593 = vmatmul.mubr.msk.bf16.vlgmr.msra.gmra.mxu0 %vm236_vm1, %v1884_v34 }
  0x4d   : > { %1628 = vmatprep.subr.bf16.mxu1 %v1745_v1  ;;  %1605 = vmatpush3.bf16.msra.mxu0 %v1699_v52 }
  0x4e   : > { %1606 = vmatprep.subr.bf16.mxu0 %v1745_v1  ;;  %1608 = vmatprep.mubr.msk.bf16.mxu0 %vm1746_vm0, %v1745_v1 }
  0x4f   : > { %1617 = vmatmul.mubr.msk.bf16.vlgmr.msra.gmra.mxu1 %vm236_vm1, %v1058_v56 }
  0x50   : > { %1629 = vmatpush3.bf16.msra.mxu1 %v1702_v57  ;;  %1632 = vmatprep.mubr.msk.bf16.mxu1 %vm1746_vm0, %v1745_v1 }
  0x51   : > { %1630 = vmatprep.subr.bf16.mxu1 %v1745_v1  ;;  %1607 = vmatpush3.bf16.msra.mxu0 %v1700_v55 }
  0x52   : > { %1620 = vmatprep.subr.bf16.mxu0 %v1745_v1 }
  0x54   : > { %1631 = vmatpush3.bf16.msra.mxu1 %v1703_v60  ;;  %1609 = vmatmul.mubr.msk.bf16.vlgmr.msra.gmra.mxu0 %vm236_vm1, %v1903_v39 }
  0x55   : > { %1621 = vmatpush3.bf16.msra.mxu0 %v1702_v57  ;;  %1624 = vmatprep.mubr.msk.bf16.mxu0 %vm1746_vm0, %v1745_v1 }
  0x56   : > { %1622 = vmatprep.subr.bf16.mxu0 %v1745_v1 }
  0x57   : > { %1633 = vmatmul.mubr.msk.bf16.vlgmr.msra.gmra.mxu1 %vm236_vm1, %v1165_v61 }
  0x59   : > { %1623 = vmatpush3.bf16.msra.mxu0 %v1703_v60 }
  0x5c   : > { %1625 = vmatmul.mubr.msk.bf16.vlgmr.msra.gmra.mxu0 %vm236_vm1, %v1924_v44 }
  0xd7   : > { %v329_v62 = vpop.f32.mrf.mxu1 }
  0xd9   : > { %v1506_v63 = vpop.f32.mrf.mxu1 }
  0xdb   : > { %v332_v0 = vpop.f32.mrf.mxu1 }
  0xdc   : > { %v274_v3 = vpop.f32.mrf.mxu0 }
  0xdd   : > { %v1507_v2 = vpop.f32.mrf.mxu1  ;;  %v330_v56 = vadd.f32 %v329_v62, %v274_v3 }
  0xde   : > { %v1498_v5 = vpop.f32.mrf.mxu0 }
  0xdf   : > { %v429_v4 = vpop.f32.mrf.mxu1 }
  0xe0   : > { %v277_v7 = vpop.f32.mrf.mxu0 }
  0xe1   : > { %v1522_v6 = vpop.f32.mrf.mxu1 }
  0xe2   : > { %v1499_v9 = vpop.f32.mrf.mxu0 }
  0xe3   : > { %v432_v8 = vpop.f32.mrf.mxu1 }
  0xe4   : > { %v386_v11 = vpop.f32.mrf.mxu0 }
  0xe5   : > { %v1523_v10 = vpop.f32.mrf.mxu1  ;;  %v430_v48 = vadd.f32 %v429_v4, %v386_v11 }
  0xe6   : > { %v1514_v13 = vpop.f32.mrf.mxu0 }
  0xe7   : > { %v543_v12 = vpop.f32.mrf.mxu1 }
  0xe8   : > { %v389_v14 = vpop.f32.mrf.mxu0  ;;  %v549_v53 = vadd.f32 %v543_v12, %v430_v48 }
  0xe9   : > { %v1538_v1 = vpop.f32.mrf.mxu1  ;;  %v1430_v14 = vld [vmem:[%s2017_s2] ss:$0 sm:$0xff] }
  0xea   : > { %v1515_v16 = vpop.f32.mrf.mxu0 }
  0xeb   : > { %v546_v15 = vpop.f32.mrf.mxu1 }
  0xec   : > { %v494_v18 = vpop.f32.mrf.mxu0 }
  0xed   : > { %v1539_v17 = vpop.f32.mrf.mxu1  ;;  %v500_v60 = vadd.f32 %v494_v18, %v330_v56 }
  0xee   : > { %v1530_v20 = vpop.f32.mrf.mxu0 }
  0xef   : > { %v650_v19 = vpop.f32.mrf.mxu1 }
  0xf0   : > { %v497_v22 = vpop.f32.mrf.mxu0  ;;  %v656_v57 = vadd.f32 %v650_v19, %v549_v53 }
  0xf1   : > { %v1554_v21 = vpop.f32.mrf.mxu1 }
  0xf2   : > { %v1531_v24 = vpop.f32.mrf.mxu0 }
  0xf3   : > { %v653_v23 = vpop.f32.mrf.mxu1 }
  0xf4   : > { %v601_v26 = vpop.f32.mrf.mxu0 }
  0xf5   : > { %v1555_v25 = vpop.f32.mrf.mxu1  ;;  %v607_v2 = vadd.f32 %v601_v26, %v500_v60 }
  0xf6   : > { %v1546_v28 = vpop.f32.mrf.mxu0 }
  0xf7   : > { %v766_v27 = vpop.f32.mrf.mxu1 }
  0xf8   : > { %v604_v30 = vpop.f32.mrf.mxu0  ;;  %v772_v61 = vadd.f32 %v766_v27, %v656_v57 }
  0xf9   : > { %v1570_v29 = vpop.f32.mrf.mxu1 }
  0xfa   : > { %v1547_v32 = vpop.f32.mrf.mxu0 }
  0xfb   : > { %v769_v31 = vpop.f32.mrf.mxu1 }
  0xfc   : > { %v708_v34 = vpop.f32.mrf.mxu0 }
  0xfd   : > { %v1571_v33 = vpop.f32.mrf.mxu1  ;;  %v714_v4 = vadd.f32 %v708_v34, %v607_v2 }
  0xfe   : > { %v1562_v36 = vpop.f32.mrf.mxu0 }
  0xff   : > { %v873_v35 = vpop.f32.mrf.mxu1 }
 0x100   : > { %v711_v38 = vpop.f32.mrf.mxu0  ;;  %v879_v5 = vadd.f32 %v873_v35, %v772_v61 }
 0x101   : > { %v1586_v37 = vpop.f32.mrf.mxu1 }
 0x102   : > { %v1563_v40 = vpop.f32.mrf.mxu0 }
 0x103   : > { %v876_v39 = vpop.f32.mrf.mxu1 }
 0x104   : > { %v824_v42 = vpop.f32.mrf.mxu0 }
 0x105   : > { %v1587_v41 = vpop.f32.mrf.mxu1  ;;  %v830_v11 = vadd.f32 %v824_v42, %v714_v4 }
 0x106   : > { %v1578_v44 = vpop.f32.mrf.mxu0 }
 0x107   : > { %v980_v43 = vpop.f32.mrf.mxu1 }
 0x108   : > { %v827_v46 = vpop.f32.mrf.mxu0  ;;  %v986_v8 = vadd.f32 %v980_v43, %v879_v5 }
 0x109   : > { %v1602_v45 = vpop.f32.mrf.mxu1 }
 0x10a   : > { %v1579_v49 = vpop.f32.mrf.mxu0 }
 0x10b   : > { %v983_v47 = vpop.f32.mrf.mxu1 }
 0x10c   : > { %v931_v51 = vpop.f32.mrf.mxu0 }
 0x10d   : > { %v1603_v50 = vpop.f32.mrf.mxu1  ;;  %v937_v3 = vadd.f32 %v931_v51, %v830_v11 }
 0x10e   : > { %v1594_v54 = vpop.f32.mrf.mxu0 }
 0x10f   : > { %v1096_v52 = vpop.f32.mrf.mxu1 }
 0x110   : > { %v934_v58 = vpop.f32.mrf.mxu0  ;;  %v1102_v12 = vadd.f32 %v1096_v52, %v986_v8 }
 0x111   : > { %v1618_v55 = vpop.f32.mrf.mxu1 }
 0x112   : > { %v1595_v63 = vpop.f32.mrf.mxu0 }
 0x113   : > { %v1099_v59 = vpop.f32.mrf.mxu1 }
 0x114   : > { %v1038_v6 = vpop.f32.mrf.mxu0 }
 0x115   : > { %v1619_v0 = vpop.f32.mrf.mxu1  ;;  %v1044_v17 = vadd.f32 %v1038_v6, %v937_v3 }
 0x116   : > { %v1610_v9 = vpop.f32.mrf.mxu0 }
 0x117   : > { %v1203_v7 = vpop.f32.mrf.mxu1 }
 0x118   : > { %v1041_v13 = vpop.f32.mrf.mxu0  ;;  %v1209_v1 = vadd.f32 %v1203_v7, %v1102_v12 }
 0x119   : > { %v1634_v10 = vpop.f32.mrf.mxu1 }
 0x11a   : > { %v1611_v15 = vpop.f32.mrf.mxu0  ;;  %v1219_v19 = vadd.f32 %v1430_v14, %v1209_v1 }
 0x11b   : > { %v1206_v62 = vpop.f32.mrf.mxu1 }
 0x11c   : > { %v1154_v18 = vpop.f32.mrf.mxu0  ;;  %v1220_v24 = vmax.f32 %v1219_v19, 0.0 }
 0x11d   : > { %v1635_v16 = vpop.f32.mrf.mxu1  ;;  %v1160_v20 = vadd.f32 %v1154_v18, %v1044_v17 }
 0x11e   : > { %v1626_v21 = vpop.f32.mrf.mxu0 }
 0x11f   : > { %v1217_v22 = vadd.f32 %v1430_v14, %v1160_v20 }
 0x120   : > { %v1157_v23 = vpop.f32.mrf.mxu0 }
 0x121   : > { %v1218_v25 = vmax.f32 %v1217_v22, 0.0 }
 0x122   : > { %v1627_v26 = vpop.f32.mrf.mxu0 }
 0x123   : > { %v1221_v27 = vmax.f32 %v1218_v25, %v1220_v24 }
 0x125   : > { %1223 = vst.msk [vmem:[#allocation2] sm:$0xff] %vm1222_vm2, %v1221_v27 }
 0x12c   : > { %v1224_v28 = vld [vmem:[#allocation2] ss:$2 sm:$0xf]  ;;  %v1226_v29 = vld [vmem:[#allocation2 + $0x1] ss:$2 sm:$0xf] }
 0x12d   : > { %v1227_v30 = vmax.f32 %v1224_v28, %v1226_v29 }
 0x12f   : > { %v1228_v31 = vpack.c.bf16 %v1227_v30, %v1227_v30 }
 0x131   : > { %1230 = vst.msk [vmem:[%s190_s28] sm:$0x3] %vm1229_vm3, %v1228_v31 }
 0x132 PF: > { %s13_s16 = sadd.s32 1, %s1743_s16   ;;  %s2019_s12 = smov %s1735_s14 }
 0x133   : > { %p10_p7 = scmp.ge.s32.totalorder %s13_s16, 10   ;;  %s2020_s13 = smov %s1739_s15 }
 0x134   : > { %s2021_s14 = smov %s2024_s17  ;;  %s2022_s15 = smov %s2028_s18 }
 0x135   :  { %12 = sbr.rel (!%p10_p7) target bundleno = 3 (0x3), region = 75 }

// kernel: cnn_forward.5
= control target key start
LH: loop header
LB: loop body
LE: loop exit
PB: predicated region body
PF: predicated region fallthrough
CT: control target
= control target key end

     0   :  { %s2240_s18 = smov 0   ;;  %s2242_s19 = smov 0   ;;  %s2530_s0 = inlined_call_operand.vmem [shape: bf16[8,1024], index: 0, kind: input, shape index: {}]   ;;  %s2531_s1 = inlined_call_operand.vmem [shape: bf16[1024,512], index: 1, kind: input, shape index: {}]   ;;  %s2532_s2 = inlined_call_operand.vmem [shape: f32[1,512], index: 2, kind: input, shape index: {}]   ;;  %s2533_s3 = inlined_call_operand.vmem [shape: bf16[512,128], index: 3, kind: input, shape index: {}]   ;;  %s2534_s4 = inlined_call_operand.vmem [shape: f32[1,128], index: 4, kind: input, shape index: {}]   ;;  %s2535_s5 = inlined_call_operand.vmem [shape: f32[8,128], index: 5, kind: output, shape index: {}]  }
   0x1   :  { %s2244_s20 = smov 0  }
   0x2 LB: > { %s24_s21 = sadd.s32 1, %s2203_s19  ;;  %p1711_p0 = scmp.ge.s32.totalorder %s2207_s20, 1  ;;  %s2207_s20 = sphi %s2244_s20, %s15_s20   ;;  %s2203_s19 = sphi %s2242_s19, %s2537_s19   ;;  %s2199_s18 = sphi %s2240_s18, %s2536_s18  }
   0x3   : > { %p25_p1 = scmp.ge.s32.totalorder %s24_s21, 2  ;;  %p218_p2 = scmp.lt.s32.totalorder %s2207_s20, 3 }
   0x5   : > { %s2539_s21 = smov (%p25_p1, %s24_s21), 0  ;;  %p219_p3 = pnand %p1711_p0, %p218_p2 }
   0x6   : > { %s1712_s22 = sshll.u32 (!%p219_p3), %s2199_s18, 2  ;;  %s1714_s23 = sshll.u32 (!%p219_p3), %s2199_s18, 6 }
   0x7   : > { %222 = sbr.rel (%p219_p3) target bundleno = 589 (0x24d), region = 40  ;;  %p258_p4 = scmp.lt.s32.totalorder (!%p219_p3), %s1712_s22, 7 }
   0x8   : > { %p266_p5 = scmp.lt.s32.totalorder (!%p219_p3), %s1714_s23, 127  ;;  %p1717_p6 = scmp.ne.s32.totalorder (!%p219_p3), %s2199_s18, 0 }
   0xc   : > { %s2541_s22 = smov (!%p258_p4, %s1712_s22), 7  ;;  %s2543_s23 = smov (!%p266_p5, %s1714_s23), 127 }
   0xd   : > { %s1713_s24 = sshll.u32 %s2541_s22, 2  ;;  %s1887_s28 = sshll.u32 %s2543_s23, 4 }
   0xe   : > { %s2265_s27 = scalar_lea.vmem %s2530_s0, %s1713_s24  ;;  %s2270_s6 = scalar_lea.vmem %s2531_s1, %s1887_s28 }
   0xf   : > { %280 = sbr.rel (%p1717_p6) target bundleno = 23 (0x17), region = 44 }
  0x14   : > { %v2209_v0 = vmov 0.0  }
  0x15   : > { %281 = vst [vmem:[#allocation2 + $0x10] sm:$0xff] %v2209_v0  ;;  %282 = vst [vmem:[#allocation2] sm:$0xff] %v2209_v0 }
  0x16   : > { %283 = vst [vmem:[#allocation2 + $0x18] sm:$0xff] %v2209_v0  ;;  %284 = vst [vmem:[#allocation2 + $0x8] sm:$0xff] %v2209_v0 }
  0x17 PF: > { %v1957_v1 = vld [vmem:[%s2270_s6 + $0xe4] ss:$16 sps:$4 sm:$0xff]   ;;  %v1961_v3 = vld [vmem:[%s2270_s6 + $0xe0] ss:$16 sps:$4 sm:$0xff]   ;;  %v290_v49 = vld [vmem:[%s2265_s27 + $0x8] sm:$0xff]  ;;  %p1850_p7 = scmp.ne.s32.totalorder %s2199_s18, 1 }
  0x18   : > { %v1959_v2 = vld [vmem:[%s2270_s6 + $0x2e4] ss:$16 sps:$4 sm:$0xff]   ;;  %1073 = vmatprep.subr.bf16.mxu0 %v1957_v1  ;;  %v1962_v4 = vld [vmem:[%s2270_s6 + $0x2e0] ss:$16 sps:$4 sm:$0xff]   ;;  %v1721_v52 = vcombine.high %v290_v49, %v290_v49 }
  0x19   : > { %1114 = vmatprep.subr.bf16.mxu1 %v1959_v2  ;;  %v1963_v5 = vld [vmem:[%s2270_s6 + $0xc4] ss:$16 sps:$4 sm:$0xff]   ;;  %1074 = vmatpush1.bf16.msra.mxu0 %v1961_v3  ;;  %v1967_v7 = vld [vmem:[%s2270_s6 + $0xc0] ss:$16 sps:$4 sm:$0xff]  }
  0x1a   : > { %1115 = vmatpush1.bf16.msra.mxu1 %v1962_v4  ;;  %v1965_v6 = vld [vmem:[%s2270_s6 + $0x2c4] ss:$16 sps:$4 sm:$0xff]   ;;  %1075 = vmatprep.subr.bf16.mxu0 %v1963_v5  ;;  %v1968_v8 = vld [vmem:[%s2270_s6 + $0x2c0] ss:$16 sps:$4 sm:$0xff]   ;;  %v2059_v5 = vld [vmem:[%s2270_s6 + $0xec] ss:$16 sps:$4 sm:$0xff]  }
  0x1b   : > { %1116 = vmatprep.subr.bf16.mxu1 %v1965_v6  ;;  %v1969_v9 = vld [vmem:[%s2270_s6 + $0xa4] ss:$16 sps:$4 sm:$0xff]   ;;  %v1973_v11 = vld [vmem:[%s2270_s6 + $0xa0] ss:$16 sps:$4 sm:$0xff]   ;;  %1146 = vmatprep.mubr.bf16.mxu1 %v1721_v52  ;;  %v2062_v6 = vld [vmem:[%s2270_s6 + $0x2ec] ss:$16 sps:$4 sm:$0xff]  }
  0x1c   : > { %v1971_v10 = vld [vmem:[%s2270_s6 + $0x2a4] ss:$16 sps:$4 sm:$0xff]   ;;  %v1974_v12 = vld [vmem:[%s2270_s6 + $0x2a0] ss:$16 sps:$4 sm:$0xff]  }
  0x1d   : > { %1076 = vmatpush1.bf16.msra.mxu0 %v1967_v7  ;;  %v1975_v13 = vld [vmem:[%s2270_s6 + $0x84] ss:$16 sps:$4 sm:$0xff]   ;;  %v1979_v15 = vld [vmem:[%s2270_s6 + $0x80] ss:$16 sps:$4 sm:$0xff]  }
  0x1e   : > { %1117 = vmatpush1.bf16.msra.mxu1 %v1968_v8  ;;  %1077 = vmatprep.subr.bf16.mxu0 %v1969_v9  ;;  %v1977_v14 = vld [vmem:[%s2270_s6 + $0x284] ss:$16 sps:$4 sm:$0xff]   ;;  %v1980_v16 = vld [vmem:[%s2270_s6 + $0x280] ss:$16 sps:$4 sm:$0xff]   ;;  %v2346_v8 = vcombine.low %v290_v49, %v290_v49  ;;  %v2057_v9 = vld [vmem:[%s2270_s6 + $0xe8] ss:$16 sps:$4 sm:$0xff]  }
  0x1f   : > { %1118 = vmatprep.subr.bf16.mxu1 %v1971_v10  ;;  %v1981_v17 = vld [vmem:[%s2270_s6 + $0x64] ss:$16 sps:$4 sm:$0xff]   ;;  %v1985_v19 = vld [vmem:[%s2270_s6 + $0x60] ss:$16 sps:$4 sm:$0xff]   ;;  %v2060_v10 = vld [vmem:[%s2270_s6 + $0x2e8] ss:$16 sps:$4 sm:$0xff]  }
  0x20   : > { %v1983_v18 = vld [vmem:[%s2270_s6 + $0x264] ss:$16 sps:$4 sm:$0xff]   ;;  %v1986_v20 = vld [vmem:[%s2270_s6 + $0x260] ss:$16 sps:$4 sm:$0xff]   ;;  %v2117_v49 = vld [vmem:[%s2270_s6 + $0x1a8] ss:$16 sps:$4 sm:$0xff]  }
  0x21   : > { %1078 = vmatpush1.bf16.msra.mxu0 %v1973_v11  ;;  %v1987_v21 = vld [vmem:[%s2270_s6 + $0x44] ss:$16 sps:$4 sm:$0xff]   ;;  %v1991_v23 = vld [vmem:[%s2270_s6 + $0x40] ss:$16 sps:$4 sm:$0xff]   ;;  %v2065_v11 = vld [vmem:[%s2270_s6 + $0xcc] ss:$16 sps:$4 sm:$0xff]  }
  0x22   : > { %1119 = vmatpush1.bf16.msra.mxu1 %v1974_v12  ;;  %1079 = vmatprep.subr.bf16.mxu0 %v1975_v13  ;;  %v1989_v22 = vld [vmem:[%s2270_s6 + $0x244] ss:$16 sps:$4 sm:$0xff]   ;;  %v1992_v24 = vld [vmem:[%s2270_s6 + $0x240] ss:$16 sps:$4 sm:$0xff]   ;;  %v2068_v12 = vld [vmem:[%s2270_s6 + $0x2cc] ss:$16 sps:$4 sm:$0xff]  }
  0x23   : > { %1120 = vmatprep.subr.bf16.mxu1 %v1977_v14  ;;  %v1993_v25 = vld [vmem:[%s2270_s6 + $0x24] ss:$16 sps:$4 sm:$0xff]   ;;  %v1997_v27 = vld [vmem:[%s2270_s6 + $0x20] ss:$16 sps:$4 sm:$0xff]   ;;  %v2063_v13 = vld [vmem:[%s2270_s6 + $0xc8] ss:$16 sps:$4 sm:$0xff]  }
  0x24   : > { %v1995_v26 = vld [vmem:[%s2270_s6 + $0x224] ss:$16 sps:$4 sm:$0xff]   ;;  %v1998_v28 = vld [vmem:[%s2270_s6 + $0x220] ss:$16 sps:$4 sm:$0xff]   ;;  %v2066_v14 = vld [vmem:[%s2270_s6 + $0x2c8] ss:$16 sps:$4 sm:$0xff]  }
  0x25   : > { %1080 = vmatpush1.bf16.msra.mxu0 %v1979_v15  ;;  %v1999_v29 = vld [vmem:[%s2270_s6 + $0x4] ss:$16 sps:$4 sm:$0xff]   ;;  %v2003_v31 = vld [vmem:[%s2270_s6] ss:$16 sps:$4 sm:$0xff]   ;;  %v2071_v15 = vld [vmem:[%s2270_s6 + $0xac] ss:$16 sps:$4 sm:$0xff]  }
  0x26   : > { %1121 = vmatpush1.bf16.msra.mxu1 %v1980_v16  ;;  %1081 = vmatprep.subr.bf16.mxu0 %v1981_v17  ;;  %v2001_v30 = vld [vmem:[%s2270_s6 + $0x204] ss:$16 sps:$4 sm:$0xff]   ;;  %v2004_v32 = vld [vmem:[%s2270_s6 + $0x200] ss:$16 sps:$4 sm:$0xff]   ;;  %v2074_v16 = vld [vmem:[%s2270_s6 + $0x2ac] ss:$16 sps:$4 sm:$0xff]  }
  0x27   : > { %1122 = vmatprep.subr.bf16.mxu1 %v1983_v18  ;;  %v2005_v33 = vld [vmem:[%s2270_s6 + $0x1e4] ss:$16 sps:$4 sm:$0xff]   ;;  %v2009_v35 = vld [vmem:[%s2270_s6 + $0x1e0] ss:$16 sps:$4 sm:$0xff]   ;;  %v2069_v17 = vld [vmem:[%s2270_s6 + $0xa8] ss:$16 sps:$4 sm:$0xff]  }
  0x28   : > { %v2007_v34 = vld [vmem:[%s2270_s6 + $0x3e4] ss:$16 sps:$4 sm:$0xff]   ;;  %v2010_v36 = vld [vmem:[%s2270_s6 + $0x3e0] ss:$16 sps:$4 sm:$0xff]   ;;  %v2072_v18 = vld [vmem:[%s2270_s6 + $0x2a8] ss:$16 sps:$4 sm:$0xff]  }
  0x29   : > { %1082 = vmatpush1.bf16.msra.mxu0 %v1985_v19  ;;  %v2011_v37 = vld [vmem:[%s2270_s6 + $0x1c4] ss:$16 sps:$4 sm:$0xff]   ;;  %v2015_v39 = vld [vmem:[%s2270_s6 + $0x1c0] ss:$16 sps:$4 sm:$0xff]   ;;  %v2077_v19 = vld [vmem:[%s2270_s6 + $0x8c] ss:$16 sps:$4 sm:$0xff]  }
  0x2a   : > { %1123 = vmatpush1.bf16.msra.mxu1 %v1986_v20  ;;  %1083 = vmatprep.subr.bf16.mxu0 %v1987_v21  ;;  %v2013_v38 = vld [vmem:[%s2270_s6 + $0x3c4] ss:$16 sps:$4 sm:$0xff]   ;;  %v2016_v40 = vld [vmem:[%s2270_s6 + $0x3c0] ss:$16 sps:$4 sm:$0xff]   ;;  %v2080_v20 = vld [vmem:[%s2270_s6 + $0x28c] ss:$16 sps:$4 sm:$0xff]  }
  0x2b   : > { %1124 = vmatprep.subr.bf16.mxu1 %v1989_v22  ;;  %v2017_v41 = vld [vmem:[%s2270_s6 + $0x1a4] ss:$16 sps:$4 sm:$0xff]   ;;  %v2021_v43 = vld [vmem:[%s2270_s6 + $0x1a0] ss:$16 sps:$4 sm:$0xff]   ;;  %v2075_v21 = vld [vmem:[%s2270_s6 + $0x88] ss:$16 sps:$4 sm:$0xff]  }
  0x2c   : > { %v2019_v42 = vld [vmem:[%s2270_s6 + $0x3a4] ss:$16 sps:$4 sm:$0xff]   ;;  %v2022_v44 = vld [vmem:[%s2270_s6 + $0x3a0] ss:$16 sps:$4 sm:$0xff]   ;;  %v2078_v22 = vld [vmem:[%s2270_s6 + $0x288] ss:$16 sps:$4 sm:$0xff]  }
  0x2d   : > { %1084 = vmatpush1.bf16.msra.mxu0 %v1991_v23  ;;  %v2023_v45 = vld [vmem:[%s2270_s6 + $0x184] ss:$16 sps:$4 sm:$0xff]   ;;  %v2027_v50 = vld [vmem:[%s2270_s6 + $0x180] ss:$16 sps:$4 sm:$0xff]   ;;  %v2083_v23 = vld [vmem:[%s2270_s6 + $0x6c] ss:$16 sps:$4 sm:$0xff]  }
  0x2e   : > { %1125 = vmatpush1.bf16.msra.mxu1 %v1992_v24  ;;  %1085 = vmatprep.subr.bf16.mxu0 %v1993_v25  ;;  %v2025_v46 = vld [vmem:[%s2270_s6 + $0x384] ss:$16 sps:$4 sm:$0xff]   ;;  %v2028_v51 = vld [vmem:[%s2270_s6 + $0x380] ss:$16 sps:$4 sm:$0xff]   ;;  %v2086_v24 = vld [vmem:[%s2270_s6 + $0x26c] ss:$16 sps:$4 sm:$0xff]  }
  0x2f   : > { %1126 = vmatprep.subr.bf16.mxu1 %v1995_v26  ;;  %v289_v47 = vld [vmem:[%s2265_s27] sm:$0xff]  ;;  %v2081_v25 = vld [vmem:[%s2270_s6 + $0x68] ss:$16 sps:$4 sm:$0xff]  }
  0x30   : > { %v2320_v48 = vcombine.high %v289_v47, %v289_v47  ;;  %v2029_v53 = vld [vmem:[%s2270_s6 + $0x164] ss:$16 sps:$4 sm:$0xff]   ;;  %v2033_v55 = vld [vmem:[%s2270_s6 + $0x160] ss:$16 sps:$4 sm:$0xff]   ;;  %v2344_v7 = vcombine.low %v289_v47, %v289_v47  ;;  %v2084_v26 = vld [vmem:[%s2270_s6 + $0x268] ss:$16 sps:$4 sm:$0xff]  }
  0x31   : > { %1086 = vmatpush1.bf16.msra.mxu0 %v1997_v27  ;;  %v2031_v54 = vld [vmem:[%s2270_s6 + $0x364] ss:$16 sps:$4 sm:$0xff]   ;;  %v2034_v56 = vld [vmem:[%s2270_s6 + $0x360] ss:$16 sps:$4 sm:$0xff]   ;;  %v2089_v27 = vld [vmem:[%s2270_s6 + $0x4c] ss:$16 sps:$4 sm:$0xff]  }
  0x32   : > { %1127 = vmatpush1.bf16.msra.mxu1 %v1998_v28  ;;  %1087 = vmatprep.subr.bf16.mxu0 %v1999_v29  ;;  %v2035_v57 = vld [vmem:[%s2270_s6 + $0x144] ss:$16 sps:$4 sm:$0xff]   ;;  %v2039_v59 = vld [vmem:[%s2270_s6 + $0x140] ss:$16 sps:$4 sm:$0xff]   ;;  %v2092_v28 = vld [vmem:[%s2270_s6 + $0x24c] ss:$16 sps:$4 sm:$0xff]  }
  0x33   : > { %1128 = vmatprep.subr.bf16.mxu1 %v2001_v30  ;;  %1105 = vmatprep.mubr.bf16.mxu0 %v2320_v48  ;;  %v2037_v58 = vld [vmem:[%s2270_s6 + $0x344] ss:$16 sps:$4 sm:$0xff]   ;;  %v2040_v60 = vld [vmem:[%s2270_s6 + $0x340] ss:$16 sps:$4 sm:$0xff]   ;;  %v2087_v29 = vld [vmem:[%s2270_s6 + $0x48] ss:$16 sps:$4 sm:$0xff]  }
  0x34   : > { %v2041_v61 = vld [vmem:[%s2270_s6 + $0x124] ss:$16 sps:$4 sm:$0xff]   ;;  %v2045_v63 = vld [vmem:[%s2270_s6 + $0x120] ss:$16 sps:$4 sm:$0xff]   ;;  %v2090_v30 = vld [vmem:[%s2270_s6 + $0x248] ss:$16 sps:$4 sm:$0xff]  }
  0x35   : > { %1088 = vmatpush1.bf16.msra.mxu0 %v2003_v31  ;;  %v2043_v62 = vld [vmem:[%s2270_s6 + $0x324] ss:$16 sps:$4 sm:$0xff]   ;;  %v2046_v0 = vld [vmem:[%s2270_s6 + $0x320] ss:$16 sps:$4 sm:$0xff]   ;;  %v2095_v31 = vld [vmem:[%s2270_s6 + $0x2c] ss:$16 sps:$4 sm:$0xff]  }
  0x36   : > { %1129 = vmatpush1.bf16.msra.mxu1 %v2004_v32  ;;  %1089 = vmatprep.subr.bf16.mxu0 %v2005_v33  ;;  %v2047_v1 = vld [vmem:[%s2270_s6 + $0x104] ss:$16 sps:$4 sm:$0xff]   ;;  %v2051_v3 = vld [vmem:[%s2270_s6 + $0x100] ss:$16 sps:$4 sm:$0xff]   ;;  %v2098_v32 = vld [vmem:[%s2270_s6 + $0x22c] ss:$16 sps:$4 sm:$0xff]  }
  0x37   : > { %1130 = vmatprep.subr.bf16.mxu1 %v2007_v34  ;;  %v2049_v2 = vld [vmem:[%s2270_s6 + $0x304] ss:$16 sps:$4 sm:$0xff]   ;;  %v2052_v4 = vld [vmem:[%s2270_s6 + $0x300] ss:$16 sps:$4 sm:$0xff]   ;;  %v2093_v33 = vld [vmem:[%s2270_s6 + $0x28] ss:$16 sps:$4 sm:$0xff]  }
  0x38   : > { %v2096_v34 = vld [vmem:[%s2270_s6 + $0x228] ss:$16 sps:$4 sm:$0xff]   ;;  %v2119_v47 = vld [vmem:[%s2270_s6 + $0x1ac] ss:$16 sps:$4 sm:$0xff]  }
  0x39   : > { %1090 = vmatpush2.bf16.msra.mxu0 %v2009_v35  ;;  %v2101_v35 = vld [vmem:[%s2270_s6 + $0xc] ss:$16 sps:$4 sm:$0xff]  }
  0x3a   : > { %1131 = vmatpush2.bf16.msra.mxu1 %v2010_v36  ;;  %1091 = vmatprep.subr.bf16.mxu0 %v2011_v37  ;;  %v2104_v36 = vld [vmem:[%s2270_s6 + $0x20c] ss:$16 sps:$4 sm:$0xff]   ;;  %v2099_v37 = vld [vmem:[%s2270_s6 + $0x8] ss:$16 sps:$4 sm:$0xff]  }
  0x3b   : > { %1132 = vmatprep.subr.bf16.mxu1 %v2013_v38  ;;  %v2102_v38 = vld [vmem:[%s2270_s6 + $0x208] ss:$16 sps:$4 sm:$0xff]  }
  0x3d   : > { %1092 = vmatpush2.bf16.msra.mxu0 %v2015_v39  ;;  %v2107_v39 = vld [vmem:[%s2270_s6 + $0x1ec] ss:$16 sps:$4 sm:$0xff]  }
  0x3e   : > { %1133 = vmatpush2.bf16.msra.mxu1 %v2016_v40  ;;  %1093 = vmatprep.subr.bf16.mxu0 %v2017_v41  ;;  %v2110_v40 = vld [vmem:[%s2270_s6 + $0x3ec] ss:$16 sps:$4 sm:$0xff]   ;;  %v2105_v41 = vld [vmem:[%s2270_s6 + $0x1e8] ss:$16 sps:$4 sm:$0xff]  }
  0x3f   : > { %1134 = vmatprep.subr.bf16.mxu1 %v2019_v42  ;;  %v2108_v42 = vld [vmem:[%s2270_s6 + $0x3e8] ss:$16 sps:$4 sm:$0xff]  }
  0x41   : > { %1094 = vmatpush2.bf16.msra.mxu0 %v2021_v43  ;;  %v2113_v43 = vld [vmem:[%s2270_s6 + $0x1cc] ss:$16 sps:$4 sm:$0xff]  }
  0x42   : > { %1135 = vmatpush2.bf16.msra.mxu1 %v2022_v44  ;;  %1095 = vmatprep.subr.bf16.mxu0 %v2023_v45  ;;  %v2116_v44 = vld [vmem:[%s2270_s6 + $0x3cc] ss:$16 sps:$4 sm:$0xff]   ;;  %v2111_v45 = vld [vmem:[%s2270_s6 + $0x1c8] ss:$16 sps:$4 sm:$0xff]  }
  0x43   : > { %1136 = vmatprep.subr.bf16.mxu1 %v2025_v46  ;;  %v2114_v46 = vld [vmem:[%s2270_s6 + $0x3c8] ss:$16 sps:$4 sm:$0xff]  }
  0x45   : > { %1096 = vmatpush2.bf16.msra.mxu0 %v2027_v50  ;;  %v2120_v50 = vld [vmem:[%s2270_s6 + $0x3a8] ss:$16 sps:$4 sm:$0xff]  }
  0x46   : > { %1137 = vmatpush2.bf16.msra.mxu1 %v2028_v51  ;;  %1097 = vmatprep.subr.bf16.mxu0 %v2029_v53  ;;  %v2125_v51 = vld [vmem:[%s2270_s6 + $0x18c] ss:$16 sps:$4 sm:$0xff]   ;;  %v2123_v53 = vld [vmem:[%s2270_s6 + $0x188] ss:$16 sps:$4 sm:$0xff]  }
  0x47   : > { %1138 = vmatprep.subr.bf16.mxu1 %v2031_v54  ;;  %v2126_v54 = vld [vmem:[%s2270_s6 + $0x388] ss:$16 sps:$4 sm:$0xff]  }
  0x49   : > { %1098 = vmatpush2.bf16.msra.mxu0 %v2033_v55  ;;  %v2131_v55 = vld [vmem:[%s2270_s6 + $0x16c] ss:$16 sps:$4 sm:$0xff]  }
  0x4a   : > { %1139 = vmatpush2.bf16.msra.mxu1 %v2034_v56  ;;  %1099 = vmatprep.subr.bf16.mxu0 %v2035_v57  ;;  %v2134_v56 = vld [vmem:[%s2270_s6 + $0x36c] ss:$16 sps:$4 sm:$0xff]   ;;  %v2129_v57 = vld [vmem:[%s2270_s6 + $0x168] ss:$16 sps:$4 sm:$0xff]  }
  0x4b   : > { %1140 = vmatprep.subr.bf16.mxu1 %v2037_v58  ;;  %v2132_v58 = vld [vmem:[%s2270_s6 + $0x368] ss:$16 sps:$4 sm:$0xff]  }
  0x4d   : > { %1100 = vmatpush2.bf16.msra.mxu0 %v2039_v59  ;;  %v2137_v59 = vld [vmem:[%s2270_s6 + $0x14c] ss:$16 sps:$4 sm:$0xff]  }
  0x4e   : > { %1141 = vmatpush2.bf16.msra.mxu1 %v2040_v60  ;;  %1101 = vmatprep.subr.bf16.mxu0 %v2041_v61  ;;  %v2140_v60 = vld [vmem:[%s2270_s6 + $0x34c] ss:$16 sps:$4 sm:$0xff]   ;;  %v2135_v61 = vld [vmem:[%s2270_s6 + $0x148] ss:$16 sps:$4 sm:$0xff]  }
  0x4f   : > { %1142 = vmatprep.subr.bf16.mxu1 %v2043_v62  ;;  %v2138_v62 = vld [vmem:[%s2270_s6 + $0x348] ss:$16 sps:$4 sm:$0xff]  }
  0x51   : > { %1102 = vmatpush2.bf16.msra.mxu0 %v2045_v63  ;;  %v2143_v63 = vld [vmem:[%s2270_s6 + $0x12c] ss:$16 sps:$4 sm:$0xff]  }
  0x52   : > { %1143 = vmatpush2.bf16.msra.mxu1 %v2046_v0  ;;  %1103 = vmatprep.subr.bf16.mxu0 %v2047_v1  ;;  %v2146_v0 = vld [vmem:[%s2270_s6 + $0x32c] ss:$16 sps:$4 sm:$0xff]   ;;  %v2141_v1 = vld [vmem:[%s2270_s6 + $0x128] ss:$16 sps:$4 sm:$0xff]  }
  0x53   : > { %1144 = vmatprep.subr.bf16.mxu1 %v2049_v2  ;;  %v2144_v2 = vld [vmem:[%s2270_s6 + $0x328] ss:$16 sps:$4 sm:$0xff]  }
  0x55   : > { %1104 = vmatpush2.bf16.msra.mxu0 %v2051_v3  ;;  %v2149_v3 = vld [vmem:[%s2270_s6 + $0x10c] ss:$16 sps:$4 sm:$0xff]  }
  0x56   : > { %1145 = vmatpush2.bf16.msra.mxu1 %v2052_v4  ;;  %1155 = vmatprep.subr.bf16.mxu0 %v2059_v5  ;;  %v2152_v4 = vld [vmem:[%s2270_s6 + $0x30c] ss:$16 sps:$4 sm:$0xff]   ;;  %v2147_v5 = vld [vmem:[%s2270_s6 + $0x108] ss:$16 sps:$4 sm:$0xff]  }
  0x57   : > { %1196 = vmatprep.subr.bf16.mxu1 %v2062_v6  ;;  %v2150_v6 = vld [vmem:[%s2270_s6 + $0x308] ss:$16 sps:$4 sm:$0xff]  }
  0x58   : > { %1106 = vmatmul.mubr.bf16.vlgmr.msra.gmra.mxu0 %v2344_v7 }
  0x59   : > { %1147 = vmatmul.mubr.bf16.vlgmr.msra.gmra.mxu1 %v2346_v8  ;;  %1156 = vmatpush1.bf16.msra.mxu0 %v2057_v9 }
  0x5a   : > { %1197 = vmatpush1.bf16.msra.mxu1 %v2060_v10  ;;  %1157 = vmatprep.subr.bf16.mxu0 %v2065_v11  ;;  %v285_v10 = vld [vmem:[#allocation2 + $0x10] sm:$0xff] }
  0x5b   : > { %1198 = vmatprep.subr.bf16.mxu1 %v2068_v12  ;;  %1187 = vmatprep.mubr.bf16.mxu0 %v2320_v48  ;;  %v2122_v48 = vld [vmem:[%s2270_s6 + $0x3ac] ss:$16 sps:$4 sm:$0xff]  }
  0x5c   : > { %1228 = vmatprep.mubr.bf16.mxu1 %v1721_v52  ;;  %v2128_v52 = vld [vmem:[%s2270_s6 + $0x38c] ss:$16 sps:$4 sm:$0xff]  }
  0x5d   : > { %1158 = vmatpush1.bf16.msra.mxu0 %v2063_v13 }
  0x5e   : > { %1199 = vmatpush1.bf16.msra.mxu1 %v2066_v14  ;;  %1159 = vmatprep.subr.bf16.mxu0 %v2071_v15  ;;  %v286_v14 = vld [vmem:[#allocation2] sm:$0xff] }
  0x5f   : > { %1200 = vmatprep.subr.bf16.mxu1 %v2074_v16 }
  0x61   : > { %1160 = vmatpush1.bf16.msra.mxu0 %v2069_v17 }
  0x62   : > { %1201 = vmatpush1.bf16.msra.mxu1 %v2072_v18  ;;  %1161 = vmatprep.subr.bf16.mxu0 %v2077_v19 }
  0x63   : > { %1202 = vmatprep.subr.bf16.mxu1 %v2080_v20 }
  0x65   : > { %1162 = vmatpush1.bf16.msra.mxu0 %v2075_v21 }
  0x66   : > { %1203 = vmatpush1.bf16.msra.mxu1 %v2078_v22  ;;  %1163 = vmatprep.subr.bf16.mxu0 %v2083_v23 }
  0x67   : > { %1204 = vmatprep.subr.bf16.mxu1 %v2086_v24 }
  0x69   : > { %1164 = vmatpush1.bf16.msra.mxu0 %v2081_v25 }
  0x6a   : > { %1205 = vmatpush1.bf16.msra.mxu1 %v2084_v26  ;;  %1165 = vmatprep.subr.bf16.mxu0 %v2089_v27  ;;  %v288_v26 = vld [vmem:[#allocation2 + $0x8] sm:$0xff] }
  0x6b   : > { %1206 = vmatprep.subr.bf16.mxu1 %v2092_v28 }
  0x6d   : > { %1166 = vmatpush1.bf16.msra.mxu0 %v2087_v29 }
  0x6e   : > { %1207 = vmatpush1.bf16.msra.mxu1 %v2090_v30  ;;  %1167 = vmatprep.subr.bf16.mxu0 %v2095_v31 }
  0x6f   : > { %1208 = vmatprep.subr.bf16.mxu1 %v2098_v32 }
  0x71   : > { %1168 = vmatpush1.bf16.msra.mxu0 %v2093_v33 }
  0x72   : > { %1209 = vmatpush1.bf16.msra.mxu1 %v2096_v34  ;;  %1169 = vmatprep.subr.bf16.mxu0 %v2101_v35 }
  0x73   : > { %1210 = vmatprep.subr.bf16.mxu1 %v2104_v36 }
  0x75   : > { %1170 = vmatpush1.bf16.msra.mxu0 %v2099_v37 }
  0x76   : > { %1211 = vmatpush1.bf16.msra.mxu1 %v2102_v38  ;;  %1171 = vmatprep.subr.bf16.mxu0 %v2107_v39 }
  0x77   : > { %1212 = vmatprep.subr.bf16.mxu1 %v2110_v40 }
  0x79   : > { %1172 = vmatpush2.bf16.msra.mxu0 %v2105_v41 }
  0x7a   : > { %1213 = vmatpush2.bf16.msra.mxu1 %v2108_v42  ;;  %1173 = vmatprep.subr.bf16.mxu0 %v2113_v43 }
  0x7b   : > { %1214 = vmatprep.subr.bf16.mxu1 %v2116_v44 }
  0x7d   : > { %1174 = vmatpush2.bf16.msra.mxu0 %v2111_v45 }
  0x7e   : > { %1215 = vmatpush2.bf16.msra.mxu1 %v2114_v46  ;;  %1175 = vmatprep.subr.bf16.mxu0 %v2119_v47 }
  0x7f   : > { %1216 = vmatprep.subr.bf16.mxu1 %v2122_v48 }
  0x81   : > { %1176 = vmatpush2.bf16.msra.mxu0 %v2117_v49 }
  0x82   : > { %1217 = vmatpush2.bf16.msra.mxu1 %v2120_v50  ;;  %1177 = vmatprep.subr.bf16.mxu0 %v2125_v51 }
  0x83   : > { %1218 = vmatprep.subr.bf16.mxu1 %v2128_v52 }
  0x85   : > { %1178 = vmatpush2.bf16.msra.mxu0 %v2123_v53 }
  0x86   : > { %1219 = vmatpush2.bf16.msra.mxu1 %v2126_v54  ;;  %1179 = vmatprep.subr.bf16.mxu0 %v2131_v55 }
  0x87   : > { %1220 = vmatprep.subr.bf16.mxu1 %v2134_v56 }
  0x89   : > { %1180 = vmatpush2.bf16.msra.mxu0 %v2129_v57 }
  0x8a   : > { %1221 = vmatpush2.bf16.msra.mxu1 %v2132_v58  ;;  %1181 = vmatprep.subr.bf16.mxu0 %v2137_v59 }
  0x8b   : > { %1222 = vmatprep.subr.bf16.mxu1 %v2140_v60 }
  0x8d   : > { %1182 = vmatpush2.bf16.msra.mxu0 %v2135_v61 }
  0x8e   : > { %1223 = vmatpush2.bf16.msra.mxu1 %v2138_v62  ;;  %1183 = vmatprep.subr.bf16.mxu0 %v2143_v63 }
  0x8f   : > { %1224 = vmatprep.subr.bf16.mxu1 %v2146_v0 }
  0x91   : > { %1184 = vmatpush2.bf16.msra.mxu0 %v2141_v1 }
  0x92   : > { %1225 = vmatpush2.bf16.msra.mxu1 %v2144_v2  ;;  %1185 = vmatprep.subr.bf16.mxu0 %v2149_v3 }
  0x93   : > { %1226 = vmatprep.subr.bf16.mxu1 %v2152_v4 }
  0x95   : > { %1186 = vmatpush2.bf16.msra.mxu0 %v2147_v5 }
  0x96   : > { %1227 = vmatpush2.bf16.msra.mxu1 %v2150_v6 }
  0x98   : > { %1188 = vmatmul.mubr.bf16.vlgmr.msra.gmra.mxu0 %v2344_v7  ;;  %v287_v7 = vld [vmem:[#allocation2 + $0x18] sm:$0xff] }
  0x99   : > { %1229 = vmatmul.mubr.bf16.vlgmr.msra.gmra.mxu1 %v2346_v8 }
 0x118   : > { %v1107_v9 = vpop.f32.mrf.mxu0 }
 0x119   : > { %v1148_v11 = vpop.f32.mrf.mxu1 }
 0x11a   : > { %v1149_v12 = vadd.f32 %v1148_v11, %v1107_v9  ;;  %v1109_v13 = vpop.f32.mrf.mxu0 }
 0x11b   : > { %v1150_v15 = vpop.f32.mrf.mxu1 }
 0x11c   : > { %v1237_v16 = vadd.f32 %v1149_v12, %v285_v10  ;;  %v1151_v17 = vadd.f32 %v1150_v15, %v1109_v13  ;;  %v1111_v18 = vpop.f32.mrf.mxu0 }
 0x11d   : > { %v1152_v19 = vpop.f32.mrf.mxu1 }
 0x11e   : > { %1241 = vst [vmem:[#allocation2 + $0x10] sm:$0xff] %v1237_v16  ;;  %v1238_v20 = vadd.f32 %v1151_v17, %v286_v14  ;;  %v1112_v21 = vpop.f32.mrf.mxu0 }
 0x11f   : > { %v1153_v22 = vpop.f32.mrf.mxu1 }
 0x120   : > { %1242 = vst [vmem:[#allocation2] sm:$0xff] %v1238_v20 }
 0x158   : > { %v1189_v23 = vpop.f32.mrf.mxu0 }
 0x159   : > { %v1230_v24 = vpop.f32.mrf.mxu1 }
 0x15a   : > { %v1231_v8 = vadd.f32 %v1230_v24, %v1189_v23  ;;  %v1191_v25 = vpop.f32.mrf.mxu0 }
 0x15b   : > { %v1232_v27 = vpop.f32.mrf.mxu1 }
 0x15c   : > { %v1239_v28 = vadd.f32 %v1231_v8, %v287_v7  ;;  %v1233_v29 = vadd.f32 %v1232_v27, %v1191_v25  ;;  %v1193_v30 = vpop.f32.mrf.mxu0  ;;  %1248 = sbr.rel (%p1850_p7) target bundleno = 589 (0x24d), region = 48 }
 0x15d   : > { %v1234_v31 = vpop.f32.mrf.mxu1 }
 0x15e   : > { %1243 = vst [vmem:[#allocation2 + $0x18] sm:$0xff] %v1239_v28  ;;  %v1240_v32 = vadd.f32 %v1233_v29, %v288_v26  ;;  %v1194_v33 = vpop.f32.mrf.mxu0 }
 0x15f   : > { %v1235_v34 = vpop.f32.mrf.mxu1 }
 0x160   : > { %1244 = vst [vmem:[#allocation2 + $0x8] sm:$0xff] %v1240_v32 }
 0x161   : > { %v2153_v35 = vld [vmem:[%s2533_s3 + $0x78] sm:$0xff]   ;;  %v2157_v39 = vld [vmem:[%s2533_s3 + $0x70] sm:$0xff]   ;;  %v2161_v43 = vld [vmem:[%s2533_s3 + $0x68] sm:$0xff]   ;;  %v1255_v54 = vlaneseq }
 0x162   : > { %v2154_v36 = vld [vmem:[%s2533_s3 + $0xf8] sm:$0xff]   ;;  %1888 = vmatprep.subr.bf16.mxu0 %v2153_v35  ;;  %v2158_v40 = vld [vmem:[%s2533_s3 + $0xf0] sm:$0xff]   ;;  %v2162_v44 = vld [vmem:[%s2533_s3 + $0xe8] sm:$0xff]  }
 0x163   : > { %v2155_v37 = vld [vmem:[%s2533_s3 + $0x38] sm:$0xff]   ;;  %1910 = vmatprep.subr.bf16.mxu1 %v2154_v36  ;;  %v2159_v41 = vld [vmem:[%s2533_s3 + $0x30] sm:$0xff]   ;;  %v2163_v45 = vld [vmem:[%s2533_s3 + $0x28] sm:$0xff]   ;;  %v1256_v59 = vshrl.u32 %v1255_v54, 7 }
 0x164   : > { %v2156_v38 = vld [vmem:[%s2533_s3 + $0xb8] sm:$0xff]   ;;  %1889 = vmatpush3.bf16.msra.mxu0 %v2155_v37  ;;  %v2160_v42 = vld [vmem:[%s2533_s3 + $0xb0] sm:$0xff]   ;;  %v2164_v46 = vld [vmem:[%s2533_s3 + $0xa8] sm:$0xff]  }
 0x165   : > { %1911 = vmatpush3.bf16.msra.mxu1 %v2156_v38  ;;  %1890 = vmatprep.subr.bf16.mxu0 %v2157_v39  ;;  %v2165_v47 = vld [vmem:[%s2533_s3 + $0x60] sm:$0xff]   ;;  %v2169_v51 = vld [vmem:[%s2533_s3 + $0x58] sm:$0xff]   ;;  %v2173_v56 = vld [vmem:[%s2533_s3 + $0x50] sm:$0xff]   ;;  %v1261_v0 = vsub.s32 1, %v1256_v59  ;;  %v1269_v2 = vsub.s32 3, %v1256_v59  ;;  %v1257_v4 = vsub.s32 0, %v1256_v59 }
 0x166   : > { %1912 = vmatprep.subr.bf16.mxu1 %v2158_v40  ;;  %v2166_v48 = vld [vmem:[%s2533_s3 + $0xe0] sm:$0xff]   ;;  %v2170_v52 = vld [vmem:[%s2533_s3 + $0xd8] sm:$0xff]   ;;  %v2174_v57 = vld [vmem:[%s2533_s3 + $0xd0] sm:$0xff]   ;;  %v1265_v6 = vsub.s32 2, %v1256_v59 }
 0x167   : > { %v2167_v49 = vld [vmem:[%s2533_s3 + $0x20] sm:$0xff]   ;;  %v2171_v53 = vld [vmem:[%s2533_s3 + $0x18] sm:$0xff]   ;;  %v2175_v58 = vld [vmem:[%s2533_s3 + $0x10] sm:$0xff]  }
 0x168   : > { %1891 = vmatpush3.bf16.msra.mxu0 %v2159_v41  ;;  %v2168_v50 = vld [vmem:[%s2533_s3 + $0xa0] sm:$0xff]   ;;  %v2172_v55 = vld [vmem:[%s2533_s3 + $0x98] sm:$0xff]   ;;  %v2176_v60 = vld [vmem:[%s2533_s3 + $0x90] sm:$0xff]  }
 0x169   : > { %1913 = vmatpush3.bf16.msra.mxu1 %v2160_v42  ;;  %1892 = vmatprep.subr.bf16.mxu0 %v2161_v43  ;;  %v2177_v61 = vld [vmem:[%s2533_s3 + $0x48] sm:$0xff]   ;;  %v2181_v3 = vld [vmem:[%s2533_s3 + $0x40] sm:$0xff]   ;;  %v1249_v16 = vld [vmem:[#allocation2 + $0x10] sm:$0xff] }
 0x16a   : > { %1914 = vmatprep.subr.bf16.mxu1 %v2162_v44  ;;  %v2178_v62 = vld [vmem:[%s2533_s3 + $0xc8] sm:$0xff]   ;;  %v2182_v5 = vld [vmem:[%s2533_s3 + $0xc0] sm:$0xff]   ;;  %v1251_v18 = vld [vmem:[#allocation2 + $0x18] sm:$0xff] }
 0x16b   : > { %v2179_v63 = vld [vmem:[%s2533_s3 + $0x8] sm:$0xff]   ;;  %v2183_v9 = vld [vmem:[%s2533_s3] sm:$0xff]  }
 0x16c   : > { %1893 = vmatpush3.bf16.msra.mxu0 %v2163_v45  ;;  %v2180_v1 = vld [vmem:[%s2533_s3 + $0x88] sm:$0xff]   ;;  %v2184_v10 = vld [vmem:[%s2533_s3 + $0x80] sm:$0xff]  }
 0x16d   : > { %1915 = vmatpush3.bf16.msra.mxu1 %v2164_v46  ;;  %1894 = vmatprep.subr.bf16.mxu0 %v2165_v47  ;;  %v1250_v11 = vld [vmem:[#allocation2] sm:$0xff]  ;;  %v1252_v13 = vld [vmem:[#allocation2 + $0x8] sm:$0xff] }
 0x16e   : > { %1916 = vmatprep.subr.bf16.mxu1 %v2166_v48  ;;  %v1253_v12 = vld [vmem:[%s2532_s2] sm:$0xf] }
 0x16f   : > { %v1262_v14 = vrot.slane %v1253_v12, %v1261_v0  ;;  %v1270_v15 = vrot.slane %v1253_v12, %v1269_v2  ;;  %v1258_v17 = vrot.slane %v1253_v12, %v1257_v4  ;;  %v1266_v19 = vrot.slane %v1253_v12, %v1265_v6  ;;  %v1851_v32 = vld [vmem:[%s2534_s4] ss:$0 sm:$0xff] }
 0x170   : > { %1895 = vmatpush3.bf16.msra.mxu0 %v2167_v49 }
 0x171   : > { %1917 = vmatpush3.bf16.msra.mxu1 %v2168_v50  ;;  %1896 = vmatprep.subr.bf16.mxu0 %v2169_v51  ;;  %v1276_v20 = vadd.f32 %v1262_v14, %v1250_v11  ;;  %v1278_v21 = vadd.f32 %v1270_v15, %v1252_v13  ;;  %v1275_v22 = vadd.f32 %v1258_v17, %v1249_v16 }
 0x172   : > { %1918 = vmatprep.subr.bf16.mxu1 %v2170_v52  ;;  %v1277_v23 = vadd.f32 %v1266_v19, %v1251_v18 }
 0x173   : > { %v1280_v7 = vmax.f32 %v1276_v20, 0.0  ;;  %v1282_v24 = vmax.f32 %v1278_v21, 0.0  ;;  %v1279_v8 = vmax.f32 %v1275_v22, 0.0 }
 0x174   : > { %1897 = vmatpush3.bf16.msra.mxu0 %v2171_v53  ;;  %v1281_v25 = vmax.f32 %v1277_v23, 0.0 }
 0x175   : > { %1919 = vmatpush3.bf16.msra.mxu1 %v2172_v55  ;;  %1898 = vmatprep.subr.bf16.mxu0 %v2173_v56  ;;  %v1284_v26 = vpack.c.bf16 %v1280_v7, %v1280_v7  ;;  %v1286_v27 = vpack.c.bf16 %v1282_v24, %v1282_v24  ;;  %v1283_v28 = vpack.c.bf16 %v1279_v8, %v1279_v8 }
 0x176   : > { %1920 = vmatprep.subr.bf16.mxu1 %v2174_v57  ;;  %v1285_v29 = vpack.c.bf16 %v1281_v25, %v1281_v25 }
 0x177   : > { %1582 = vmatprep.mubr.bf16.mxu0 %v1284_v26  ;;  %1622 = vmatprep.mubr.bf16.mxu1 %v1286_v27 }
 0x178   : > { %1899 = vmatpush3.bf16.msra.mxu0 %v2175_v58 }
 0x179   : > { %1921 = vmatpush3.bf16.msra.mxu1 %v2176_v60  ;;  %1900 = vmatprep.subr.bf16.mxu0 %v2177_v61 }
 0x17a   : > { %1922 = vmatprep.subr.bf16.mxu1 %v2178_v62 }
 0x17c   : > { %1901 = vmatpush3.bf16.msra.mxu0 %v2179_v63 }
 0x17d   : > { %1923 = vmatpush3.bf16.msra.mxu1 %v2180_v1  ;;  %1902 = vmatprep.subr.bf16.mxu0 %v2181_v3 }
 0x17e   : > { %1924 = vmatprep.subr.bf16.mxu1 %v2182_v5 }
 0x180   : > { %1903 = vmatpush3.bf16.msra.mxu0 %v2183_v9 }
 0x181   : > { %1925 = vmatpush3.bf16.msra.mxu1 %v2184_v10 }
 0x183   : > { %1583 = vmatmul.mubr.bf16.vlgmr.msra.gmra.mxu0 %v1283_v28 }
 0x184   : > { %1623 = vmatmul.mubr.bf16.vlgmr.msra.gmra.mxu1 %v1285_v29 }
 0x243   : > { %v1904_v30 = vpop.f32.mrf.mxu0 }
 0x244   : > { %v1926_v31 = vpop.f32.mrf.mxu1 }
 0x245   : > { %v1905_v33 = vpop.f32.mrf.mxu0 }
 0x246   : > { %v1927_v34 = vpop.f32.mrf.mxu1  ;;  %v1906_v35 = vadd.f32 %v1905_v33, %v1904_v30 }
 0x247   : > { %v1907_v36 = vpop.f32.mrf.mxu0  ;;  %v1928_v39 = vadd.f32 %v1927_v34, %v1926_v31 }
 0x248   : > { %v1929_v37 = vpop.f32.mrf.mxu1  ;;  %v1585_v38 = vadd.f32 %v1906_v35, %v1851_v32 }
 0x249   : > { %v1908_v40 = vpop.f32.mrf.mxu0 }
 0x24a   : > { %v1930_v41 = vpop.f32.mrf.mxu1  ;;  %v1625_v42 = vadd.f32 %v1928_v39, %v1585_v38 }
 0x24c   : > { %1630 = vst [vmem:[%s2535_s5] sm:$0xff] %v1625_v42 }
 0x24d PF: > { %s15_s20 = sadd.s32 1, %s2207_s20   ;;  %s2536_s18 = smov %s2203_s19 }
 0x24e   : > { %p12_p8 = scmp.ge.s32.totalorder %s15_s20, 4   ;;  %s2537_s19 = smov %s2539_s21 }
 0x250   :  { %14 = sbr.rel (!%p12_p8) target bundleno = 2 (0x2), region = 81 }

</bundles_post_ra>
